<compile_context>
chip_gen: v6e
topology: v6e:2x2x1
jax: 0.10.0
libtpu: 0.0.40
codegen_flags: <defaults>
</compile_context>

<pallas_src>
import functools

import jax
import jax.numpy as jnp
from jax.experimental import pallas as pl
from jax.experimental.pallas import tpu as pltpu

LEAK = 0.2
EPS = 1e-5


def _round_up(x, m):
    return ((x + m - 1) // m) * m


# --------------------------- generation-aware config ------------------------ #

@functools.lru_cache(maxsize=None)
def _tpu_config():
    """Returns (max_row_tile, vmem_limit_bytes) based on the TPU generation's VMEM."""
    vmem_bytes = 64 * 1024 * 1024          # conservative default (v7x-sized)
    try:
        info = pltpu.get_tpu_info()
        vmem_bytes = int(getattr(info, "vmem_capacity_bytes", vmem_bytes))
    except Exception:
        pass
    if vmem_bytes >= 96 * 1024 * 1024:     # v5e / v6e: 128 MiB VMEM per core
        return 1024, 100 * 1024 * 1024
    return 512, 48 * 1024 * 1024           # v7x: 64 MiB physical -> leave headroom


def _vmem_limit():
    return _tpu_config()[1]


def _vmem_need(tm, tk, Cp, out_itemsize, nk):
    need = 2 * tm * tk * 2                 # A tile, bf16, double-buffered
    need += 2 * tk * Cp * 2                # W tile, bf16 (budget 2x even when resident)
    need += 2 * tm * Cp * out_itemsize     # output tile
    need += 2 * 3 * 8 * Cp * 4             # bias / partial-stat blocks (generous)
    if nk > 1:
        need += tm * Cp * 4                # f32 accumulator scratch (fallback path)
    return need


def _k_tile_candidates(Kp):
    n = Kp // 128
    return [d * 128 for d in range(n, 0, -1) if n % d == 0]   # descending, Kp first


def _plan_tiles(M, Kp, Cp, out_itemsize):
    max_tm, vmem_limit = _tpu_config()
    budget = vmem_limit - (4 << 20)
    cap = min(max_tm, _round_up(M, 16))
    tm_cands = [t for t in (1024, 512, 256, 128, 64, 32, 16) if t <= cap] or [16]
    tk_cands = _k_tile_candidates(Kp)

    # Prefer a single K pass (W held resident in VMEM, no acc scratch).
    full_k_tms = [t for t in tm_cands if t >= 128] or tm_cands[:1]
    for tm in full_k_tms:
        if _vmem_need(tm, Kp, Cp, out_itemsize, 1) <= budget:
            return tm, Kp
    # Fallback: tile K as a grid reduction axis with an f32 accumulator.
    for tm in tm_cands:
        for tk in tk_cands:
            if _vmem_need(tm, tk, Cp, out_itemsize, Kp // tk) <= budget:
                return tm, tk
    return tm_cands[-1], tk_cands[-1]


# ------------------------------- Pallas kernels ----------------------------- #

def _conv_gemm_kernel(a_ref, w_ref, b_ref, o_ref, *scratch, act, nk):
    """Conv-as-GEMM with fused bias (+ optional LeakyReLU) epilogue."""
    if nk == 1:
        y = jnp.dot(a_ref[...], w_ref[...], preferred_element_type=jnp.float32)
        y = y + b_ref[...]
        if act:
            y = jnp.where(y > 0, y, LEAK * y)
        o_ref[...] = y.astype(o_ref.dtype)
    else:
        acc_ref = scratch[0]
        k = pl.program_id(1)

        @pl.when(k == 0)
        def _():
            acc_ref[...] = jnp.zeros_like(acc_ref)

        acc_ref[...] += jnp.dot(a_ref[...], w_ref[...],
                                preferred_element_type=jnp.float32)

        @pl.when(k == nk - 1)
        def _():
            y = acc_ref[...] + b_ref[...]
            if act:
                y = jnp.where(y > 0, y, LEAK * y)
            o_ref[...] = y.astype(o_ref.dtype)


def _conv_gemm_bn_kernel(a_ref, w_ref, o_ref, psum_ref, psq_ref, *scratch,
                         m_true, nk):
    """Conv-as-GEMM (no bias) emitting per-row-tile partial BN statistics.

    psum/psq are (8, Cp) blocks at block index (i, 0): row 0 holds this row tile's
    partial sum / sum-of-squares, rows 1..7 are zero.  Because every tile writes its
    own block, the row grid axis stays "parallel" (megacore-safe on v7x) and the
    final reduction happens outside the kernel (tiny).
    """
    i = pl.program_id(0)
    tm = o_ref.shape[0]

    def epilogue(y):
        o_ref[...] = y.astype(o_ref.dtype)
        # Padded rows (>= m_true) are exactly zero already (zero A rows, no bias);
        # the mask is cheap insurance.
        rows = i * tm + jax.lax.broadcasted_iota(jnp.int32, (tm, 1), 0)
        ym = jnp.where(rows < m_true, y, 0.0)
        s = jnp.sum(ym, axis=0, keepdims=True)            # (1, Cp), f32
        sq = jnp.sum(ym * ym, axis=0, keepdims=True)
        row0 = jax.lax.broadcasted_iota(jnp.int32, (8, 1), 0) == 0
        psum_ref[...] = jnp.where(row0, s, 0.0)
        psq_ref[...] = jnp.where(row0, sq, 0.0)

    if nk == 1:
        epilogue(jnp.dot(a_ref[...], w_ref[...],
                         preferred_element_type=jnp.float32))
    else:
        acc_ref = scratch[0]
        k = pl.program_id(1)

        @pl.when(k == 0)
        def _():
            acc_ref[...] = jnp.zeros_like(acc_ref)

        acc_ref[...] += jnp.dot(a_ref[...], w_ref[...],
                                preferred_element_type=jnp.float32)

        @pl.when(k == nk - 1)
        def _():
            epilogue(acc_ref[...])


# ----------------------------- pallas_call wrappers ------------------------- #

def conv_gemm(a, w, bias, *, act, out_dtype, tm, tk):
    Mp, Kp = a.shape
    Cp = w.shape[1]
    nm, nk = Mp // tm, Kp // tk
    kern = functools.partial(_conv_gemm_kernel, act=act, nk=nk)
    if nk == 1:
        grid = (nm,)
        in_specs = [pl.BlockSpec((tm, Kp), lambda i: (i, 0)),
                    pl.BlockSpec((Kp, Cp), lambda i: (0, 0)),   # W resident, 1 DMA
                    pl.BlockSpec((1, Cp), lambda i: (0, 0))]
        out_specs = pl.BlockSpec((tm, Cp), lambda i: (i, 0))
        scratch = []
        dims = ("parallel",)
    else:
        grid = (nm, nk)
        in_specs = [pl.BlockSpec((tm, tk), lambda i, k: (i, k)),
                    pl.BlockSpec((tk, Cp), lambda i, k: (k, 0)),
                    pl.BlockSpec((1, Cp), lambda i, k: (0, 0))]
        out_specs = pl.BlockSpec((tm, Cp), lambda i, k: (i, 0))
        scratch = [pltpu.VMEM((tm, Cp), jnp.float32)]
        dims = ("parallel", "arbitrary")
    return pl.pallas_call(
        kern,
        out_shape=jax.ShapeDtypeStruct((Mp, Cp), out_dtype),
        grid=grid,
        in_specs=in_specs,
        out_specs=out_specs,
        scratch_shapes=scratch,
        compiler_params=pltpu.CompilerParams(
            dimension_semantics=dims, vmem_limit_bytes=_vmem_limit()),
    )(a, w, bias)


def conv_gemm_bn(a, w, *, m_true, tm, tk):
    Mp, Kp = a.shape
    Cp = w.shape[1]
    nm, nk = Mp // tm, Kp // tk
    kern = functools.partial(_conv_gemm_bn_kernel, m_true=m_true, nk=nk)
    stat_shape = jax.ShapeDtypeStruct((nm * 8, Cp), jnp.float32)
    out_shapes = (jax.ShapeDtypeStruct((Mp, Cp), jnp.bfloat16), stat_shape, stat_shape)
    if nk == 1:
        grid = (nm,)
        in_specs = [pl.BlockSpec((tm, Kp), lambda i: (i, 0)),
                    pl.BlockSpec((Kp, Cp), lambda i: (0, 0))]   # W resident, 1 DMA
        out_specs = (pl.BlockSpec((tm, Cp), lambda i: (i, 0)),
                     pl.BlockSpec((8, Cp), lambda i: (i, 0)),
                     pl.BlockSpec((8, Cp), lambda i: (i, 0)))
        scratch = []
        dims = ("parallel",)
    else:
        grid = (nm, nk)
        in_specs = [pl.BlockSpec((tm, tk), lambda i, k: (i, k)),
                    pl.BlockSpec((tk, Cp), lambda i, k: (k, 0))]
        out_specs = (pl.BlockSpec((tm, Cp), lambda i, k: (i, 0)),
                     pl.BlockSpec((8, Cp), lambda i, k: (i, 0)),
                     pl.BlockSpec((8, Cp), lambda i, k: (i, 0)))
        scratch = [pltpu.VMEM((tm, Cp), jnp.float32)]
        dims = ("parallel", "arbitrary")
    return pl.pallas_call(
        kern,
        out_shape=out_shapes,
        grid=grid,
        in_specs=in_specs,
        out_specs=out_specs,
        scratch_shapes=scratch,
        compiler_params=pltpu.CompilerParams(
            dimension_semantics=dims, vmem_limit_bytes=_vmem_limit()),
    )(a, w)


# ------------------------------------ glue ---------------------------------- #

def _im2col(x_nhwc, k, stride, pad):
    """4x4-tap patch slab from 16 static strided slices (no advanced-index gather).

    Built directly in bf16; XLA fuses pad + slices + concat (and any elementwise
    producer such as the previous layer's BN affine + LeakyReLU) into one slab write.
    K ordering is (kh, kw, cin), matching the (kh, kw, cin, cout) weight reshape.
    """
    x = jnp.pad(x_nhwc.astype(jnp.bfloat16),
                ((0, 0), (pad, pad), (pad, pad), (0, 0)))
    N, H, W, C = x.shape
    Ho = (H - k) // stride + 1
    Wo = (W - k) // stride + 1
    taps = []
    for dh in range(k):
        for dw in range(k):
            taps.append(jax.lax.slice(
                x,
                (0, dh, dw, 0),
                (N, dh + (Ho - 1) * stride + 1, dw + (Wo - 1) * stride + 1, C),
                (1, stride, stride, 1)))                       # (N, Ho, Wo, C)
    patches = jnp.concatenate(taps, axis=-1)                   # (N, Ho, Wo, k*k*C)
    return patches.reshape(N * Ho * Wo, k * k * C), (N, Ho, Wo)


def conv_layer(x_nhwc, p):
    k = 4
    stride = p["stride"]
    cout = p["w"].shape[-1]

    # TODO(synk): fully fusing the 16-tap gather into the GEMM K-loop (manual DMA of
    # the NHWC activation) would remove the patch slab's 4x/16x duplication entirely.
    patches, (N, Ho, Wo) = _im2col(x_nhwc, k, stride, 1)
    M, K = patches.shape
    Kp = _round_up(K, 128)              # lane-dense K (layer 1 has K = 16*input_nc)
    Cp = _round_up(cout, 128)

    out_dtype = jnp.float32 if p["is_final"] else jnp.bfloat16
    tm, tk = _plan_tiles(M, Kp, Cp, jnp.dtype(out_dtype).itemsize)
    Mp = _round_up(M, tm)

    a = patches
    if Mp > M or Kp > K:
        a = jnp.pad(a, ((0, Mp - M), (0, Kp - K)))
    wp = p["w"].reshape(K, cout).astype(jnp.bfloat16)
    if Kp > K or Cp > cout:
        wp = jnp.pad(wp, ((0, Kp - K), (0, Cp - cout)))

    if p["has_bn"]:
        y, psum, psq = conv_gemm_bn(a, wp, m_true=M, tm=tm, tk=tk)
        s = jnp.sum(psum, axis=0)[:cout]
        sq = jnp.sum(psq, axis=0)[:cout]
        mean = s / M
        # single-pass (biased) variance, clamped against catastrophic cancellation
        var = jnp.maximum(sq / M - mean * mean, 0.0)
        scale = p["gamma"] * jax.lax.rsqrt(var + EPS)
        shift = p["beta"] - mean * scale
        # BN affine + LeakyReLU is deliberately a wrapper op: XLA fuses it into the
        # next layer's patch-slab construction, so no standalone activation slab is
        # written or re-read (the raw conv output is already bf16).
        y = y[:M, :cout].astype(jnp.float32) * scale + shift
        y = jnp.where(y > 0, y, LEAK * y).astype(jnp.bfloat16)
    else:
        bias = jnp.zeros((1, Cp), jnp.float32)
        if p["b"] is not None:
            bias = bias.at[0, :cout].set(p["b"])
        # TODO(synk): the final cout=1 layer wastes 127/128 MXU columns; a VPU matvec
        # (or folding it into the previous epilogue) would be marginally cheaper.
        y = conv_gemm(a, wp, bias, act=p["act"], out_dtype=out_dtype, tm=tm, tk=tk)
        y = y[:M, :cout]

    return y.reshape(N, Ho, Wo, cout)


def build_discriminator_params(key, input_nc, ndf=64, n_layers=3):
    # mirrors the PyTorch __init__ layer construction (BatchNorm => use_bias=False)
    cfgs = [(input_nc, ndf, 2, True, False, True, False)]
    nf_mult = 1
    for n in range(1, n_layers):
        nf_prev, nf_mult = nf_mult, min(2 ** n, 8)
        cfgs.append((ndf * nf_prev, ndf * nf_mult, 2, False, True, True, False))
    nf_prev, nf_mult = nf_mult, min(2 ** n_layers, 8)
    cfgs.append((ndf * nf_prev, ndf * nf_mult, 1, False, True, True, False))
    cfgs.append((ndf * nf_mult, 1, 1, True, False, False, True))

    params = []
    for (cin, cout, stride, has_bias, has_bn, act, is_final) in cfgs:
        key, wk, bk = jax.random.split(key, 3)
        # weight stored as (kh, kw, cin, cout) == PyTorch (cout, cin, kh, kw).transpose(2,3,1,0)
        w = jax.random.normal(wk, (4, 4, cin, cout), jnp.float32) * 0.02
        b = (jax.random.normal(bk, (cout,), jnp.float32) * 0.02) if has_bias else None
        gamma = jnp.ones((cout,), jnp.float32) if has_bn else None
        beta = jnp.zeros((cout,), jnp.float32) if has_bn else None
        params.append(dict(w=w, b=b, gamma=gamma, beta=beta, stride=stride,
                           act=act, has_bn=has_bn, is_final=is_final))
    return params


def discriminator_forward(x_nchw, params):
    x = jnp.transpose(x_nchw, (0, 2, 3, 1))    # NCHW -> NHWC
    for p in params:
        x = conv_layer(x, p)
    return jnp.transpose(x, (0, 3, 1, 2))      # NHWC -> NCHW


if __name__ == "__main__":
    key = jax.random.PRNGKey(0)
    kx, kp = jax.random.split(key)

    N, input_nc, H, W = 2, 3, 32, 32
    ndf, n_layers = 16, 3

    x = jax.random.normal(kx, (N, input_nc, H, W), jnp.float32)
    params = build_discriminator_params(kp, input_nc, ndf=ndf, n_layers=n_layers)

    fwd = jax.jit(lambda inp: discriminator_forward(inp, params))
    out = fwd(x)
    jax.block_until_ready(out)

    # 32 -> 16 -> 8 -> 4 -> 3 -> 2 spatial; single-channel patch logits
    assert out.shape == (N, 1, 2, 2), out.shape
    assert bool(jnp.all(jnp.isfinite(out)))
    print("KERNEL_OK")
</pallas_src>

<mosaic_0001>
module attributes {stable_mosaic.version = 11 : i64} {
  func.func @_conv_gemm_kernel(%arg0: i32, %arg1: memref<512x128xbf16, #tpu.memory_space<vmem>>, %arg2: memref<128x128xbf16, #tpu.memory_space<vmem>>, %arg3: memref<1x128xf32, #tpu.memory_space<vmem>>, %arg4: memref<512x128xbf16, #tpu.memory_space<vmem>>) attributes {dimension_semantics = [#tpu.dimension_semantics<parallel>], iteration_bounds = array<i64: 1>, scalar_prefetch = 0 : i64, scratch_operands = 0 : i64, tpu.core_type = #tpu.core_type<tc>, window_params = [{transform_indices = @transform_0, window_bounds = array<i64: 512, 128>}, {pipeline_mode = #tpu.pipeline_mode<synchronous>, transform_indices = @transform_1, window_bounds = array<i64: 128, 128>}, {pipeline_mode = #tpu.pipeline_mode<synchronous>, transform_indices = @transform_2, window_bounds = array<i64: 1, 128>}, {transform_indices = @transform_3, window_bounds = array<i64: 512, 128>}]} {
    %c0 = arith.constant 0 : index
    %c0_0 = arith.constant 0 : index
    %0 = vector.load %arg1[%c0, %c0_0] : memref<512x128xbf16, #tpu.memory_space<vmem>>, vector<512x128xbf16>
    %c0_1 = arith.constant 0 : index
    %c0_2 = arith.constant 0 : index
    %1 = vector.load %arg2[%c0_1, %c0_2] : memref<128x128xbf16, #tpu.memory_space<vmem>>, vector<128x128xbf16>
    %cst = arith.constant dense<0.000000e+00> : vector<512x128xf32>
    %2 = tpu.matmul %0, %1, %cst {dimension_numbers = #tpu.dot_dimension_numbers<[1], [0], [0], [1], [0, 0, 1, 1], [], []>} : vector<512x128xbf16>, vector<128x128xbf16>, vector<512x128xf32> -> vector<512x128xf32>
    %c0_3 = arith.constant 0 : index
    %c0_4 = arith.constant 0 : index
    %3 = vector.load %arg3[%c0_3, %c0_4] : memref<1x128xf32, #tpu.memory_space<vmem>>, vector<1x128xf32>
    %4 = vector.broadcast %3 : vector<1x128xf32> to vector<512x128xf32>
    %5 = arith.addf %2, %4 : vector<512x128xf32>
    %cst_5 = arith.constant 0.000000e+00 : f32
    %6 = vector.broadcast %cst_5 : f32 to vector<512x128xf32>
    %7 = arith.cmpf ogt, %5, %6 : vector<512x128xf32>
    %cst_6 = arith.constant 2.000000e-01 : f32
    %8 = vector.broadcast %cst_6 : f32 to vector<512x128xf32>
    %9 = arith.mulf %8, %5 : vector<512x128xf32>
    %10 = arith.select %7, %5, %9 : vector<512x128xi1>, vector<512x128xf32>
    %11 = arith.truncf %10 : vector<512x128xf32> to vector<512x128xbf16>
    %c0_7 = arith.constant 0 : index
    %c0_8 = arith.constant 0 : index
    %12 = vector.load %arg4[%c0_7, %c0_8] : memref<512x128xbf16, #tpu.memory_space<vmem>>, vector<512x128xbf16>
    tpu.vector_store %arg4[%c0_7, %c0_8], %11 {strides = array<i32>} : memref<512x128xbf16, #tpu.memory_space<vmem>>, vector<512x128xbf16>,
    return
  }
  func.func @transform_0(%arg0: i32) -> (i32, i32) {
    %c0_i32 = arith.constant 0 : i32
    %c0_i32_0 = arith.constant 0 : i32
    return %arg0, %c0_i32 : i32, i32
  }
  func.func @transform_1(%arg0: i32) -> (i32, i32) {
    %c0_i32 = arith.constant 0 : i32
    %c0_i32_0 = arith.constant 0 : i32
    %c0_i32_1 = arith.constant 0 : i32
    return %c0_i32, %c0_i32_0 : i32, i32
  }
  func.func @transform_2(%arg0: i32) -> (i32, i32) {
    %c0_i32 = arith.constant 0 : i32
    %c0_i32_0 = arith.constant 0 : i32
    %c0_i32_1 = arith.constant 0 : i32
    return %c0_i32, %c0_i32_0 : i32, i32
  }
  func.func @transform_3(%arg0: i32) -> (i32, i32) {
    %c0_i32 = arith.constant 0 : i32
    %c0_i32_0 = arith.constant 0 : i32
    return %arg0, %c0_i32 : i32, i32
  }
}

module attributes {stable_mosaic.version = 11 : i64} {
  func.func @_conv_gemm_bn_kernel(%arg0: i32, %arg1: memref<128x256xbf16, #tpu.memory_space<vmem>>, %arg2: memref<256x128xbf16, #tpu.memory_space<vmem>>, %arg3: memref<128x128xbf16, #tpu.memory_space<vmem>>, %arg4: memref<8x128xf32, #tpu.memory_space<vmem>>, %arg5: memref<8x128xf32, #tpu.memory_space<vmem>>) attributes {dimension_semantics = [#tpu.dimension_semantics<parallel>], iteration_bounds = array<i64: 1>, scalar_prefetch = 0 : i64, scratch_operands = 0 : i64, tpu.core_type = #tpu.core_type<tc>, window_params = [{transform_indices = @transform_0, window_bounds = array<i64: 128, 256>}, {pipeline_mode = #tpu.pipeline_mode<synchronous>, transform_indices = @transform_1, window_bounds = array<i64: 256, 128>}, {transform_indices = @transform_2, window_bounds = array<i64: 128, 128>}, {transform_indices = @transform_3, window_bounds = array<i64: 8, 128>}, {transform_indices = @transform_4, window_bounds = array<i64: 8, 128>}]} {
    %c0 = arith.constant 0 : index
    %c0_0 = arith.constant 0 : index
    %0 = vector.load %arg1[%c0, %c0_0] : memref<128x256xbf16, #tpu.memory_space<vmem>>, vector<128x256xbf16>
    %c0_1 = arith.constant 0 : index
    %c0_2 = arith.constant 0 : index
    %1 = vector.load %arg2[%c0_1, %c0_2] : memref<256x128xbf16, #tpu.memory_space<vmem>>, vector<256x128xbf16>
    %cst = arith.constant dense<0.000000e+00> : vector<128x128xf32>
    %2 = tpu.matmul %0, %1, %cst {dimension_numbers = #tpu.dot_dimension_numbers<[1], [0], [0], [1], [0, 0, 1, 1], [], []>} : vector<128x256xbf16>, vector<256x128xbf16>, vector<128x128xf32> -> vector<128x128xf32>
    %3 = arith.truncf %2 : vector<128x128xf32> to vector<128x128xbf16>
    %c0_3 = arith.constant 0 : index
    %c0_4 = arith.constant 0 : index
    %4 = vector.load %arg3[%c0_3, %c0_4] : memref<128x128xbf16, #tpu.memory_space<vmem>>, vector<128x128xbf16>
    tpu.vector_store %arg3[%c0_3, %c0_4], %3 {strides = array<i32>} : memref<128x128xbf16, #tpu.memory_space<vmem>>, vector<128x128xbf16>,
    %c128_i32 = arith.constant 128 : i32
    %5 = arith.muli %arg0, %c128_i32 : i32
    %6 = tpu.iota {dimensions = array<i32: 0>} : vector<128x1xi32>
    %7 = vector.broadcast %5 : i32 to vector<128x1xi32>
    %8 = arith.addi %7, %6 : vector<128x1xi32>
    %c128_i32_5 = arith.constant 128 : i32
    %9 = vector.broadcast %c128_i32_5 : i32 to vector<128x1xi32>
    %10 = arith.cmpi slt, %8, %9 : vector<128x1xi32>
    %cst_6 = arith.constant 0.000000e+00 : f32
    %11 = vector.shape_cast %10 : vector<128x1xi1> to vector<128x1xi1>
    %12 = vector.broadcast %11 : vector<128x1xi1> to vector<128x128xi1>
    %13 = vector.broadcast %cst_6 : f32 to vector<128x128xf32>
    %14 = arith.select %12, %2, %13 : vector<128x128xi1>, vector<128x128xf32>
    %cst_7 = arith.constant dense<0.000000e+00> : vector<128xf32>
    %15 = vector.multi_reduction <add>, %14, %cst_7 [0] : vector<128x128xf32> to vector<128xf32>
    %16 = vector.shape_cast %15 : vector<128xf32> to vector<1x128xf32>
    %17 = arith.mulf %14, %14 : vector<128x128xf32>
    %cst_8 = arith.constant dense<0.000000e+00> : vector<128xf32>
    %18 = vector.multi_reduction <add>, %17, %cst_8 [0] : vector<128x128xf32> to vector<128xf32>
    %19 = vector.shape_cast %18 : vector<128xf32> to vector<1x128xf32>
    %20 = tpu.iota {dimensions = array<i32: 0>} : vector<8x1xi32>
    %c0_i32 = arith.constant 0 : i32
    %21 = vector.broadcast %c0_i32 : i32 to vector<8x1xi32>
    %22 = arith.cmpi eq, %20, %21 : vector<8x1xi32>
    %cst_9 = arith.constant 0.000000e+00 : f32
    %23 = vector.shape_cast %22 : vector<8x1xi1> to vector<8x1xi1>
    %24 = vector.broadcast %23 : vector<8x1xi1> to vector<8x128xi1>
    %25 = vector.shape_cast %16 : vector<1x128xf32> to vector<1x128xf32>
    %26 = vector.broadcast %25 : vector<1x128xf32> to vector<8x128xf32>
    %27 = vector.broadcast %cst_9 : f32 to vector<8x128xf32>
    %28 = arith.select %24, %26, %27 : vector<8x128xi1>, vector<8x128xf32>
    %c0_10 = arith.constant 0 : index
    %c0_11 = arith.constant 0 : index
    %29 = vector.load %arg4[%c0_10, %c0_11] : memref<8x128xf32, #tpu.memory_space<vmem>>, vector<8x128xf32>
    tpu.vector_store %arg4[%c0_10, %c0_11], %28 {strides = array<i32>} : memref<8x128xf32, #tpu.memory_space<vmem>>, vector<8x128xf32>,
    %cst_12 = arith.constant 0.000000e+00 : f32
    %30 = vector.shape_cast %22 : vector<8x1xi1> to vector<8x1xi1>
    %31 = vector.broadcast %30 : vector<8x1xi1> to vector<8x128xi1>
    %32 = vector.shape_cast %19 : vector<1x128xf32> to vector<1x128xf32>
    %33 = vector.broadcast %32 : vector<1x128xf32> to vector<8x128xf32>
    %34 = vector.broadcast %cst_12 : f32 to vector<8x128xf32>
    %35 = arith.select %31, %33, %34 : vector<8x128xi1>, vector<8x128xf32>
    %c0_13 = arith.constant 0 : index
    %c0_14 = arith.constant 0 : index
    %36 = vector.load %arg5[%c0_13, %c0_14] : memref<8x128xf32, #tpu.memory_space<vmem>>, vector<8x128xf32>
    tpu.vector_store %arg5[%c0_13, %c0_14], %35 {strides = array<i32>} : memref<8x128xf32, #tpu.memory_space<vmem>>, vector<8x128xf32>,
    return
  }
  func.func @transform_0(%arg0: i32) -> (i32, i32) {
    %c0_i32 = arith.constant 0 : i32
    %c0_i32_0 = arith.constant 0 : i32
    return %arg0, %c0_i32 : i32, i32
  }
  func.func @transform_1(%arg0: i32) -> (i32, i32) {
    %c0_i32 = arith.constant 0 : i32
    %c0_i32_0 = arith.constant 0 : i32
    %c0_i32_1 = arith.constant 0 : i32
    return %c0_i32, %c0_i32_0 : i32, i32
  }
  func.func @transform_2(%arg0: i32) -> (i32, i32) {
    %c0_i32 = arith.constant 0 : i32
    %c0_i32_0 = arith.constant 0 : i32
    return %arg0, %c0_i32 : i32, i32
  }
  func.func @transform_3(%arg0: i32) -> (i32, i32) {
    %c0_i32 = arith.constant 0 : i32
    %c0_i32_0 = arith.constant 0 : i32
    return %arg0, %c0_i32 : i32, i32
  }
  func.func @transform_4(%arg0: i32) -> (i32, i32) {
    %c0_i32 = arith.constant 0 : i32
    %c0_i32_0 = arith.constant 0 : i32
    return %arg0, %c0_i32 : i32, i32
  }
}

module attributes {stable_mosaic.version = 11 : i64} {
  func.func @_conv_gemm_bn_kernel(%arg0: i32, %arg1: memref<32x512xbf16, #tpu.memory_space<vmem>>, %arg2: memref<512x128xbf16, #tpu.memory_space<vmem>>, %arg3: memref<32x128xbf16, #tpu.memory_space<vmem>>, %arg4: memref<8x128xf32, #tpu.memory_space<vmem>>, %arg5: memref<8x128xf32, #tpu.memory_space<vmem>>) attributes {dimension_semantics = [#tpu.dimension_semantics<parallel>], iteration_bounds = array<i64: 1>, scalar_prefetch = 0 : i64, scratch_operands = 0 : i64, tpu.core_type = #tpu.core_type<tc>, window_params = [{transform_indices = @transform_0, window_bounds = array<i64: 32, 512>}, {pipeline_mode = #tpu.pipeline_mode<synchronous>, transform_indices = @transform_1, window_bounds = array<i64: 512, 128>}, {transform_indices = @transform_2, window_bounds = array<i64: 32, 128>}, {transform_indices = @transform_3, window_bounds = array<i64: 8, 128>}, {transform_indices = @transform_4, window_bounds = array<i64: 8, 128>}]} {
    %c0 = arith.constant 0 : index
    %c0_0 = arith.constant 0 : index
    %0 = vector.load %arg1[%c0, %c0_0] : memref<32x512xbf16, #tpu.memory_space<vmem>>, vector<32x512xbf16>
    %c0_1 = arith.constant 0 : index
    %c0_2 = arith.constant 0 : index
    %1 = vector.load %arg2[%c0_1, %c0_2] : memref<512x128xbf16, #tpu.memory_space<vmem>>, vector<512x128xbf16>
    %cst = arith.constant dense<0.000000e+00> : vector<32x128xf32>
    %2 = tpu.matmul %0, %1, %cst {dimension_numbers = #tpu.dot_dimension_numbers<[1], [0], [0], [1], [0, 0, 1, 1], [], []>} : vector<32x512xbf16>, vector<512x128xbf16>, vector<32x128xf32> -> vector<32x128xf32>
    %3 = arith.truncf %2 : vector<32x128xf32> to vector<32x128xbf16>
    %c0_3 = arith.constant 0 : index
    %c0_4 = arith.constant 0 : index
    %4 = vector.load %arg3[%c0_3, %c0_4] : memref<32x128xbf16, #tpu.memory_space<vmem>>, vector<32x128xbf16>
    tpu.vector_store %arg3[%c0_3, %c0_4], %3 {strides = array<i32>} : memref<32x128xbf16, #tpu.memory_space<vmem>>, vector<32x128xbf16>,
    %c32_i32 = arith.constant 32 : i32
    %5 = arith.muli %arg0, %c32_i32 : i32
    %6 = tpu.iota {dimensions = array<i32: 0>} : vector<32x1xi32>
    %7 = vector.broadcast %5 : i32 to vector<32x1xi32>
    %8 = arith.addi %7, %6 : vector<32x1xi32>
    %c32_i32_5 = arith.constant 32 : i32
    %9 = vector.broadcast %c32_i32_5 : i32 to vector<32x1xi32>
    %10 = arith.cmpi slt, %8, %9 : vector<32x1xi32>
    %cst_6 = arith.constant 0.000000e+00 : f32
    %11 = vector.shape_cast %10 : vector<32x1xi1> to vector<32x1xi1>
    %12 = vector.broadcast %11 : vector<32x1xi1> to vector<32x128xi1>
    %13 = vector.broadcast %cst_6 : f32 to vector<32x128xf32>
    %14 = arith.select %12, %2, %13 : vector<32x128xi1>, vector<32x128xf32>
    %cst_7 = arith.constant dense<0.000000e+00> : vector<128xf32>
    %15 = vector.multi_reduction <add>, %14, %cst_7 [0] : vector<32x128xf32> to vector<128xf32>
    %16 = vector.shape_cast %15 : vector<128xf32> to vector<1x128xf32>
    %17 = arith.mulf %14, %14 : vector<32x128xf32>
    %cst_8 = arith.constant dense<0.000000e+00> : vector<128xf32>
    %18 = vector.multi_reduction <add>, %17, %cst_8 [0] : vector<32x128xf32> to vector<128xf32>
    %19 = vector.shape_cast %18 : vector<128xf32> to vector<1x128xf32>
    %20 = tpu.iota {dimensions = array<i32: 0>} : vector<8x1xi32>
    %c0_i32 = arith.constant 0 : i32
    %21 = vector.broadcast %c0_i32 : i32 to vector<8x1xi32>
    %22 = arith.cmpi eq, %20, %21 : vector<8x1xi32>
    %cst_9 = arith.constant 0.000000e+00 : f32
    %23 = vector.shape_cast %22 : vector<8x1xi1> to vector<8x1xi1>
    %24 = vector.broadcast %23 : vector<8x1xi1> to vector<8x128xi1>
    %25 = vector.shape_cast %16 : vector<1x128xf32> to vector<1x128xf32>
    %26 = vector.broadcast %25 : vector<1x128xf32> to vector<8x128xf32>
    %27 = vector.broadcast %cst_9 : f32 to vector<8x128xf32>
    %28 = arith.select %24, %26, %27 : vector<8x128xi1>, vector<8x128xf32>
    %c0_10 = arith.constant 0 : index
    %c0_11 = arith.constant 0 : index
    %29 = vector.load %arg4[%c0_10, %c0_11] : memref<8x128xf32, #tpu.memory_space<vmem>>, vector<8x128xf32>
    tpu.vector_store %arg4[%c0_10, %c0_11], %28 {strides = array<i32>} : memref<8x128xf32, #tpu.memory_space<vmem>>, vector<8x128xf32>,
    %cst_12 = arith.constant 0.000000e+00 : f32
    %30 = vector.shape_cast %22 : vector<8x1xi1> to vector<8x1xi1>
    %31 = vector.broadcast %30 : vector<8x1xi1> to vector<8x128xi1>
    %32 = vector.shape_cast %19 : vector<1x128xf32> to vector<1x128xf32>
    %33 = vector.broadcast %32 : vector<1x128xf32> to vector<8x128xf32>
    %34 = vector.broadcast %cst_12 : f32 to vector<8x128xf32>
    %35 = arith.select %31, %33, %34 : vector<8x128xi1>, vector<8x128xf32>
    %c0_13 = arith.constant 0 : index
    %c0_14 = arith.constant 0 : index
    %36 = vector.load %arg5[%c0_13, %c0_14] : memref<8x128xf32, #tpu.memory_space<vmem>>, vector<8x128xf32>
    tpu.vector_store %arg5[%c0_13, %c0_14], %35 {strides = array<i32>} : memref<8x128xf32, #tpu.memory_space<vmem>>, vector<8x128xf32>,
    return
  }
  func.func @transform_0(%arg0: i32) -> (i32, i32) {
    %c0_i32 = arith.constant 0 : i32
    %c0_i32_0 = arith.constant 0 : i32
    return %arg0, %c0_i32 : i32, i32
  }
  func.func @transform_1(%arg0: i32) -> (i32, i32) {
    %c0_i32 = arith.constant 0 : i32
    %c0_i32_0 = arith.constant 0 : i32
    %c0_i32_1 = arith.constant 0 : i32
    return %c0_i32, %c0_i32_0 : i32, i32
  }
  func.func @transform_2(%arg0: i32) -> (i32, i32) {
    %c0_i32 = arith.constant 0 : i32
    %c0_i32_0 = arith.constant 0 : i32
    return %arg0, %c0_i32 : i32, i32
  }
  func.func @transform_3(%arg0: i32) -> (i32, i32) {
    %c0_i32 = arith.constant 0 : i32
    %c0_i32_0 = arith.constant 0 : i32
    return %arg0, %c0_i32 : i32, i32
  }
  func.func @transform_4(%arg0: i32) -> (i32, i32) {
    %c0_i32 = arith.constant 0 : i32
    %c0_i32_0 = arith.constant 0 : i32
    return %arg0, %c0_i32 : i32, i32
  }
}

module attributes {stable_mosaic.version = 11 : i64} {
  func.func @_conv_gemm_bn_kernel(%arg0: i32, %arg1: memref<32x1024xbf16, #tpu.memory_space<vmem>>, %arg2: memref<1024x128xbf16, #tpu.memory_space<vmem>>, %arg3: memref<32x128xbf16, #tpu.memory_space<vmem>>, %arg4: memref<8x128xf32, #tpu.memory_space<vmem>>, %arg5: memref<8x128xf32, #tpu.memory_space<vmem>>) attributes {dimension_semantics = [#tpu.dimension_semantics<parallel>], iteration_bounds = array<i64: 1>, scalar_prefetch = 0 : i64, scratch_operands = 0 : i64, tpu.core_type = #tpu.core_type<tc>, window_params = [{transform_indices = @transform_0, window_bounds = array<i64: 32, 1024>}, {pipeline_mode = #tpu.pipeline_mode<synchronous>, transform_indices = @transform_1, window_bounds = array<i64: 1024, 128>}, {transform_indices = @transform_2, window_bounds = array<i64: 32, 128>}, {transform_indices = @transform_3, window_bounds = array<i64: 8, 128>}, {transform_indices = @transform_4, window_bounds = array<i64: 8, 128>}]} {
    %c0 = arith.constant 0 : index
    %c0_0 = arith.constant 0 : index
    %0 = vector.load %arg1[%c0, %c0_0] : memref<32x1024xbf16, #tpu.memory_space<vmem>>, vector<32x1024xbf16>
    %c0_1 = arith.constant 0 : index
    %c0_2 = arith.constant 0 : index
    %1 = vector.load %arg2[%c0_1, %c0_2] : memref<1024x128xbf16, #tpu.memory_space<vmem>>, vector<1024x128xbf16>
    %cst = arith.constant dense<0.000000e+00> : vector<32x128xf32>
    %2 = tpu.matmul %0, %1, %cst {dimension_numbers = #tpu.dot_dimension_numbers<[1], [0], [0], [1], [0, 0, 1, 1], [], []>} : vector<32x1024xbf16>, vector<1024x128xbf16>, vector<32x128xf32> -> vector<32x128xf32>
    %3 = arith.truncf %2 : vector<32x128xf32> to vector<32x128xbf16>
    %c0_3 = arith.constant 0 : index
    %c0_4 = arith.constant 0 : index
    %4 = vector.load %arg3[%c0_3, %c0_4] : memref<32x128xbf16, #tpu.memory_space<vmem>>, vector<32x128xbf16>
    tpu.vector_store %arg3[%c0_3, %c0_4], %3 {strides = array<i32>} : memref<32x128xbf16, #tpu.memory_space<vmem>>, vector<32x128xbf16>,
    %c32_i32 = arith.constant 32 : i32
    %5 = arith.muli %arg0, %c32_i32 : i32
    %6 = tpu.iota {dimensions = array<i32: 0>} : vector<32x1xi32>
    %7 = vector.broadcast %5 : i32 to vector<32x1xi32>
    %8 = arith.addi %7, %6 : vector<32x1xi32>
    %c18_i32 = arith.constant 18 : i32
    %9 = vector.broadcast %c18_i32 : i32 to vector<32x1xi32>
    %10 = arith.cmpi slt, %8, %9 : vector<32x1xi32>
    %cst_5 = arith.constant 0.000000e+00 : f32
    %11 = vector.shape_cast %10 : vector<32x1xi1> to vector<32x1xi1>
    %12 = vector.broadcast %11 : vector<32x1xi1> to vector<32x128xi1>
    %13 = vector.broadcast %cst_5 : f32 to vector<32x128xf32>
    %14 = arith.select %12, %2, %13 : vector<32x128xi1>, vector<32x128xf32>
    %cst_6 = arith.constant dense<0.000000e+00> : vector<128xf32>
    %15 = vector.multi_reduction <add>, %14, %cst_6 [0] : vector<32x128xf32> to vector<128xf32>
    %16 = vector.shape_cast %15 : vector<128xf32> to vector<1x128xf32>
    %17 = arith.mulf %14, %14 : vector<32x128xf32>
    %cst_7 = arith.constant dense<0.000000e+00> : vector<128xf32>
    %18 = vector.multi_reduction <add>, %17, %cst_7 [0] : vector<32x128xf32> to vector<128xf32>
    %19 = vector.shape_cast %18 : vector<128xf32> to vector<1x128xf32>
    %20 = tpu.iota {dimensions = array<i32: 0>} : vector<8x1xi32>
    %c0_i32 = arith.constant 0 : i32
    %21 = vector.broadcast %c0_i32 : i32 to vector<8x1xi32>
    %22 = arith.cmpi eq, %20, %21 : vector<8x1xi32>
    %cst_8 = arith.constant 0.000000e+00 : f32
    %23 = vector.shape_cast %22 : vector<8x1xi1> to vector<8x1xi1>
    %24 = vector.broadcast %23 : vector<8x1xi1> to vector<8x128xi1>
    %25 = vector.shape_cast %16 : vector<1x128xf32> to vector<1x128xf32>
    %26 = vector.broadcast %25 : vector<1x128xf32> to vector<8x128xf32>
    %27 = vector.broadcast %cst_8 : f32 to vector<8x128xf32>
    %28 = arith.select %24, %26, %27 : vector<8x128xi1>, vector<8x128xf32>
    %c0_9 = arith.constant 0 : index
    %c0_10 = arith.constant 0 : index
    %29 = vector.load %arg4[%c0_9, %c0_10] : memref<8x128xf32, #tpu.memory_space<vmem>>, vector<8x128xf32>
    tpu.vector_store %arg4[%c0_9, %c0_10], %28 {strides = array<i32>} : memref<8x128xf32, #tpu.memory_space<vmem>>, vector<8x128xf32>,
    %cst_11 = arith.constant 0.000000e+00 : f32
    %30 = vector.shape_cast %22 : vector<8x1xi1> to vector<8x1xi1>
    %31 = vector.broadcast %30 : vector<8x1xi1> to vector<8x128xi1>
    %32 = vector.shape_cast %19 : vector<1x128xf32> to vector<1x128xf32>
    %33 = vector.broadcast %32 : vector<1x128xf32> to vector<8x128xf32>
    %34 = vector.broadcast %cst_11 : f32 to vector<8x128xf32>
    %35 = arith.select %31, %33, %34 : vector<8x128xi1>, vector<8x128xf32>
    %c0_12 = arith.constant 0 : index
    %c0_13 = arith.constant 0 : index
    %36 = vector.load %arg5[%c0_12, %c0_13] : memref<8x128xf32, #tpu.memory_space<vmem>>, vector<8x128xf32>
    tpu.vector_store %arg5[%c0_12, %c0_13], %35 {strides = array<i32>} : memref<8x128xf32, #tpu.memory_space<vmem>>, vector<8x128xf32>,
    return
  }
  func.func @transform_0(%arg0: i32) -> (i32, i32) {
    %c0_i32 = arith.constant 0 : i32
    %c0_i32_0 = arith.constant 0 : i32
    return %arg0, %c0_i32 : i32, i32
  }
  func.func @transform_1(%arg0: i32) -> (i32, i32) {
    %c0_i32 = arith.constant 0 : i32
    %c0_i32_0 = arith.constant 0 : i32
    %c0_i32_1 = arith.constant 0 : i32
    return %c0_i32, %c0_i32_0 : i32, i32
  }
  func.func @transform_2(%arg0: i32) -> (i32, i32) {
    %c0_i32 = arith.constant 0 : i32
    %c0_i32_0 = arith.constant 0 : i32
    return %arg0, %c0_i32 : i32, i32
  }
  func.func @transform_3(%arg0: i32) -> (i32, i32) {
    %c0_i32 = arith.constant 0 : i32
    %c0_i32_0 = arith.constant 0 : i32
    return %arg0, %c0_i32 : i32, i32
  }
  func.func @transform_4(%arg0: i32) -> (i32, i32) {
    %c0_i32 = arith.constant 0 : i32
    %c0_i32_0 = arith.constant 0 : i32
    return %arg0, %c0_i32 : i32, i32
  }
}

module attributes {stable_mosaic.version = 11 : i64} {
  func.func @_conv_gemm_kernel(%arg0: i32, %arg1: memref<16x2048xbf16, #tpu.memory_space<vmem>>, %arg2: memref<2048x128xbf16, #tpu.memory_space<vmem>>, %arg3: memref<1x128xf32, #tpu.memory_space<vmem>>, %arg4: memref<16x128xf32, #tpu.memory_space<vmem>>) attributes {dimension_semantics = [#tpu.dimension_semantics<parallel>], iteration_bounds = array<i64: 1>, scalar_prefetch = 0 : i64, scratch_operands = 0 : i64, tpu.core_type = #tpu.core_type<tc>, window_params = [{transform_indices = @transform_0, window_bounds = array<i64: 16, 2048>}, {pipeline_mode = #tpu.pipeline_mode<synchronous>, transform_indices = @transform_1, window_bounds = array<i64: 2048, 128>}, {pipeline_mode = #tpu.pipeline_mode<synchronous>, transform_indices = @transform_2, window_bounds = array<i64: 1, 128>}, {transform_indices = @transform_3, window_bounds = array<i64: 16, 128>}]} {
    %c0 = arith.constant 0 : index
    %c0_0 = arith.constant 0 : index
    %0 = vector.load %arg1[%c0, %c0_0] : memref<16x2048xbf16, #tpu.memory_space<vmem>>, vector<16x2048xbf16>
    %c0_1 = arith.constant 0 : index
    %c0_2 = arith.constant 0 : index
    %1 = vector.load %arg2[%c0_1, %c0_2] : memref<2048x128xbf16, #tpu.memory_space<vmem>>, vector<2048x128xbf16>
    %cst = arith.constant dense<0.000000e+00> : vector<16x128xf32>
    %2 = tpu.matmul %0, %1, %cst {dimension_numbers = #tpu.dot_dimension_numbers<[1], [0], [0], [1], [0, 0, 1, 1], [], []>} : vector<16x2048xbf16>, vector<2048x128xbf16>, vector<16x128xf32> -> vector<16x128xf32>
    %c0_3 = arith.constant 0 : index
    %c0_4 = arith.constant 0 : index
    %3 = vector.load %arg3[%c0_3, %c0_4] : memref<1x128xf32, #tpu.memory_space<vmem>>, vector<1x128xf32>
    %4 = vector.broadcast %3 : vector<1x128xf32> to vector<16x128xf32>
    %5 = arith.addf %2, %4 : vector<16x128xf32>
    %c0_5 = arith.constant 0 : index
    %c0_6 = arith.constant 0 : index
    %6 = vector.load %arg4[%c0_5, %c0_6] : memref<16x128xf32, #tpu.memory_space<vmem>>, vector<16x128xf32>
    tpu.vector_store %arg4[%c0_5, %c0_6], %5 {strides = array<i32>} : memref<16x128xf32, #tpu.memory_space<vmem>>, vector<16x128xf32>,
    return
  }
  func.func @transform_0(%arg0: i32) -> (i32, i32) {
    %c0_i32 = arith.constant 0 : i32
    %c0_i32_0 = arith.constant 0 : i32
    return %arg0, %c0_i32 : i32, i32
  }
  func.func @transform_1(%arg0: i32) -> (i32, i32) {
    %c0_i32 = arith.constant 0 : i32
    %c0_i32_0 = arith.constant 0 : i32
    %c0_i32_1 = arith.constant 0 : i32
    return %c0_i32, %c0_i32_0 : i32, i32
  }
  func.func @transform_2(%arg0: i32) -> (i32, i32) {
    %c0_i32 = arith.constant 0 : i32
    %c0_i32_0 = arith.constant 0 : i32
    %c0_i32_1 = arith.constant 0 : i32
    return %c0_i32, %c0_i32_0 : i32, i32
  }
  func.func @transform_3(%arg0: i32) -> (i32, i32) {
    %c0_i32 = arith.constant 0 : i32
    %c0_i32_0 = arith.constant 0 : i32
    return %arg0, %c0_i32 : i32, i32
  }
}

</mosaic_0001>

<bundles_post_ra>
// kernel: _lambda_.5
= control target key start
LH: loop header
LB: loop body
LE: loop exit
PB: predicated region body
PF: predicated region fallthrough
CT: control target
= control target key end

     0   :  { %s1991_s1 = inlined_call_operand.vmem [shape: bf16[128,128], index: 1, kind: input, shape index: {}]   ;;  %s1992_s0 = inlined_call_operand.vmem [shape: bf16[512,128], index: 0, kind: input, shape index: {}]   ;;  %s1993_s2 = inlined_call_operand.vmem [shape: f32[1,128], index: 2, kind: input, shape index: {}]   ;;  %s1994_s3 = inlined_call_operand.vmem [shape: bf16[512,128], index: 3, kind: output, shape index: {}]  }
   0x1   :  { %v1643_v0 = vld [vmem:[%s1991_s1 + $0x38] sm:$0xff]   ;;  %v1644_v1 = vld [vmem:[%s1991_s1 + $0x30] sm:$0xff]   ;;  %v1645_v2 = vld [vmem:[%s1991_s1 + $0x28] sm:$0xff]  }
   0x2   :  { %1547 = vmatprep.subr.bf16.mxu0 %v1643_v0  ;;  %1627 = vmatprep.subr.bf16.mxu1 %v1643_v0  ;;  %v1646_v3 = vld [vmem:[%s1991_s1 + $0x20] sm:$0xff]   ;;  %v1647_v6 = vld [vmem:[%s1991_s1 + $0x18] sm:$0xff]   ;;  %v1648_v7 = vld [vmem:[%s1991_s1 + $0x10] sm:$0xff]  }
   0x3   :  { %1548 = vmatpush3.bf16.msra.mxu0 %v1643_v0  ;;  %1635 = vmatpush3.bf16.msra.mxu1 %v1643_v0  ;;  %v1651_v4 = vld [vmem:[%s1992_s0] sm:$0xff]   ;;  %v1649_v8 = vld [vmem:[%s1991_s1 + $0x8] sm:$0xff]   ;;  %v1655_v12 = vld [vmem:[%s1992_s0 + $0x10] sm:$0xff]  }
   0x4   :  { %1549 = vmatprep.subr.bf16.mxu0 %v1644_v1  ;;  %1628 = vmatprep.subr.bf16.mxu1 %v1644_v1  ;;  %v1652_v5 = vld [vmem:[%s1992_s0 + $0x80] sm:$0xff]   ;;  %v1653_v10 = vld [vmem:[%s1992_s0 + $0x8] sm:$0xff]   ;;  %v1656_v13 = vld [vmem:[%s1992_s0 + $0x90] sm:$0xff]  }
   0x5   :  { %1563 = vmatprep.mubr.bf16.mxu0 %v1651_v4  ;;  %1595 = vmatprep.mubr.bf16.mxu1 %v1652_v5  ;;  %v1650_v9 = vld [vmem:[%s1991_s1] sm:$0xff]   ;;  %v1654_v11 = vld [vmem:[%s1992_s0 + $0x88] sm:$0xff]   ;;  %v1657_v14 = vld [vmem:[%s1992_s0 + $0x18] sm:$0xff]  }
   0x6   :  { %v1658_v15 = vld [vmem:[%s1992_s0 + $0x98] sm:$0xff]   ;;  %v1659_v16 = vld [vmem:[%s1992_s0 + $0x20] sm:$0xff]   ;;  %v1661_v18 = vld [vmem:[%s1992_s0 + $0x28] sm:$0xff]  }
   0x7   :  { %1550 = vmatpush3.bf16.msra.mxu0 %v1644_v1  ;;  %1636 = vmatpush3.bf16.msra.mxu1 %v1644_v1  ;;  %v1660_v17 = vld [vmem:[%s1992_s0 + $0xa0] sm:$0xff]   ;;  %v1662_v19 = vld [vmem:[%s1992_s0 + $0xa8] sm:$0xff]   ;;  %v1663_v20 = vld [vmem:[%s1992_s0 + $0x30] sm:$0xff]  }
   0x8   :  { %1551 = vmatprep.subr.bf16.mxu0 %v1645_v2  ;;  %1629 = vmatprep.subr.bf16.mxu1 %v1645_v2  ;;  %v1664_v21 = vld [vmem:[%s1992_s0 + $0xb0] sm:$0xff]   ;;  %v1665_v22 = vld [vmem:[%s1992_s0 + $0x38] sm:$0xff]   ;;  %v1667_v24 = vld [vmem:[%s1992_s0 + $0x40] sm:$0xff]  }
   0x9   :  { %v1666_v23 = vld [vmem:[%s1992_s0 + $0xb8] sm:$0xff]   ;;  %v1668_v25 = vld [vmem:[%s1992_s0 + $0xc0] sm:$0xff]   ;;  %v1669_v26 = vld [vmem:[%s1992_s0 + $0x48] sm:$0xff]  }
   0xa   :  { %v1670_v27 = vld [vmem:[%s1992_s0 + $0xc8] sm:$0xff]   ;;  %v1671_v28 = vld [vmem:[%s1992_s0 + $0x50] sm:$0xff]   ;;  %v1673_v30 = vld [vmem:[%s1992_s0 + $0x58] sm:$0xff]  }
   0xb   :  { %1552 = vmatpush3.bf16.msra.mxu0 %v1645_v2  ;;  %1637 = vmatpush3.bf16.msra.mxu1 %v1645_v2  ;;  %v1672_v29 = vld [vmem:[%s1992_s0 + $0xd0] sm:$0xff]   ;;  %v1674_v31 = vld [vmem:[%s1992_s0 + $0xd8] sm:$0xff]   ;;  %v1675_v32 = vld [vmem:[%s1992_s0 + $0x60] sm:$0xff]  }
   0xc   :  { %1553 = vmatprep.subr.bf16.mxu0 %v1646_v3  ;;  %1630 = vmatprep.subr.bf16.mxu1 %v1646_v3  ;;  %v1676_v33 = vld [vmem:[%s1992_s0 + $0xe0] sm:$0xff]   ;;  %v1677_v34 = vld [vmem:[%s1992_s0 + $0x68] sm:$0xff]   ;;  %v1679_v36 = vld [vmem:[%s1992_s0 + $0x70] sm:$0xff]  }
   0xd   :  { %v1678_v35 = vld [vmem:[%s1992_s0 + $0xe8] sm:$0xff]   ;;  %v1680_v37 = vld [vmem:[%s1992_s0 + $0xf0] sm:$0xff]   ;;  %v1681_v38 = vld [vmem:[%s1992_s0 + $0x78] sm:$0xff]  }
   0xe   :  { %v1682_v39 = vld [vmem:[%s1992_s0 + $0xf8] sm:$0xff]   ;;  %v1826_v40 = vld [vmem:[%s1993_s2] ss:$0 sm:$0xff] }
   0xf   :  { %1554 = vmatpush3.bf16.msra.mxu0 %v1646_v3  ;;  %1638 = vmatpush3.bf16.msra.mxu1 %v1646_v3 }
  0x10   :  { %1555 = vmatprep.subr.bf16.mxu0 %v1647_v6  ;;  %1631 = vmatprep.subr.bf16.mxu1 %v1647_v6 }
  0x13   :  { %1556 = vmatpush3.bf16.msra.mxu0 %v1647_v6  ;;  %1639 = vmatpush3.bf16.msra.mxu1 %v1647_v6 }
  0x14   :  { %1557 = vmatprep.subr.bf16.mxu0 %v1648_v7  ;;  %1632 = vmatprep.subr.bf16.mxu1 %v1648_v7 }
  0x17   :  { %1558 = vmatpush3.bf16.msra.mxu0 %v1648_v7  ;;  %1640 = vmatpush3.bf16.msra.mxu1 %v1648_v7 }
  0x18   :  { %1559 = vmatprep.subr.bf16.mxu0 %v1649_v8  ;;  %1633 = vmatprep.subr.bf16.mxu1 %v1649_v8 }
  0x1b   :  { %1560 = vmatpush3.bf16.msra.mxu0 %v1649_v8  ;;  %1641 = vmatpush3.bf16.msra.mxu1 %v1649_v8 }
  0x1c   :  { %1561 = vmatprep.subr.bf16.mxu0 %v1650_v9  ;;  %1634 = vmatprep.subr.bf16.mxu1 %v1650_v9 }
  0x1f   :  { %1562 = vmatpush3.bf16.msra.mxu0 %v1650_v9  ;;  %1642 = vmatpush3.bf16.msra.mxu1 %v1650_v9 }
  0x22   :  { %1564 = vmatmul.mubr.bf16.vlgmr.msra.gmra.mxu0 %v1653_v10  ;;  %1596 = vmatmul.mubr.bf16.vlgmr.msra.gmra.mxu1 %v1654_v11 }
  0x23   :  { %1567 = vmatprep.mubr.bf16.mxu0 %v1655_v12  ;;  %1599 = vmatprep.mubr.bf16.mxu1 %v1656_v13 }
  0x2a   :  { %1568 = vmatmul.mubr.bf16.gmra.mxu0 %v1657_v14  ;;  %1600 = vmatmul.mubr.bf16.gmra.mxu1 %v1658_v15 }
  0x2b   :  { %1571 = vmatprep.mubr.bf16.mxu0 %v1659_v16  ;;  %1603 = vmatprep.mubr.bf16.mxu1 %v1660_v17 }
  0x32   :  { %1572 = vmatmul.mubr.bf16.gmra.mxu0 %v1661_v18  ;;  %1604 = vmatmul.mubr.bf16.gmra.mxu1 %v1662_v19 }
  0x33   :  { %1575 = vmatprep.mubr.bf16.mxu0 %v1663_v20  ;;  %1607 = vmatprep.mubr.bf16.mxu1 %v1664_v21 }
  0x3a   :  { %1576 = vmatmul.mubr.bf16.gmra.mxu0 %v1665_v22  ;;  %1608 = vmatmul.mubr.bf16.gmra.mxu1 %v1666_v23 }
  0x3b   :  { %1579 = vmatprep.mubr.bf16.mxu0 %v1667_v24  ;;  %1611 = vmatprep.mubr.bf16.mxu1 %v1668_v25 }
  0x42   :  { %1580 = vmatmul.mubr.bf16.gmra.mxu0 %v1669_v26  ;;  %1612 = vmatmul.mubr.bf16.gmra.mxu1 %v1670_v27 }
  0x43   :  { %1583 = vmatprep.mubr.bf16.mxu0 %v1671_v28  ;;  %1615 = vmatprep.mubr.bf16.mxu1 %v1672_v29 }
  0x4a   :  { %1584 = vmatmul.mubr.bf16.gmra.mxu0 %v1673_v30  ;;  %1616 = vmatmul.mubr.bf16.gmra.mxu1 %v1674_v31 }
  0x4b   :  { %1587 = vmatprep.mubr.bf16.mxu0 %v1675_v32  ;;  %1619 = vmatprep.mubr.bf16.mxu1 %v1676_v33 }
  0x52   :  { %1588 = vmatmul.mubr.bf16.gmra.mxu0 %v1677_v34  ;;  %1620 = vmatmul.mubr.bf16.gmra.mxu1 %v1678_v35 }
  0x53   :  { %1591 = vmatprep.mubr.bf16.mxu0 %v1679_v36  ;;  %1623 = vmatprep.mubr.bf16.mxu1 %v1680_v37 }
  0x5a   :  { %1592 = vmatmul.mubr.bf16.gmra.mxu0 %v1681_v38  ;;  %1624 = vmatmul.mubr.bf16.gmra.mxu1 %v1682_v39 }
  0xe2   :  { %v1565_v41 = vpop.f32.mrf.mxu0  ;;  %v1597_v42 = vpop.f32.mrf.mxu1 }
  0xe3   :  { %v385_v43 = vadd.f32 %v1565_v41, %v1826_v40  ;;  %v513_v44 = vadd.f32 %v1597_v42, %v1826_v40 }
  0xe4   :  { %v376_v45 = vpop.f32.mrf.mxu0  ;;  %v504_v46 = vpop.f32.mrf.mxu1 }
  0xe5   :  { %vm633_vm0 = vcmp.gt.f32.partialorder %v385_v43, 0.0  ;;  %v697_v47 = vmul.f32 0.2, %v385_v43  ;;  %vm665_vm1 = vcmp.gt.f32.partialorder %v513_v44, 0.0  ;;  %v729_v48 = vmul.f32 0.2, %v513_v44 }
  0xe6   :  { %v377_v49 = vadd.f32 %v1826_v40, %v376_v45  ;;  %v505_v50 = vadd.f32 %v1826_v40, %v504_v46  ;;  %v1566_v51 = vpop.f32.mrf.mxu0  ;;  %v1598_v52 = vpop.f32.mrf.mxu1 }
  0xe7   :  { %v761_v53 = vsel %vm633_vm0, %v385_v43, %v697_v47  ;;  %v388_v54 = vadd.f32 %v1566_v51, %v1826_v40  ;;  %v516_v55 = vadd.f32 %v1598_v52, %v1826_v40  ;;  %v793_v56 = vsel %vm665_vm1, %v513_v44, %v729_v48 }
  0xe8   :  { %vm631_vm2 = vcmp.gt.f32.partialorder %v377_v49, 0.0  ;;  %v695_v57 = vmul.f32 0.2, %v377_v49  ;;  %vm663_vm3 = vcmp.gt.f32.partialorder %v505_v50, 0.0  ;;  %v379_v58 = vpop.f32.mrf.mxu0  ;;  %v507_v59 = vpop.f32.mrf.mxu1  ;;  %v727_v63 = vmul.f32 0.2, %v505_v50 }
  0xe9   :  { %vm634_vm4 = vcmp.gt.f32.partialorder %v388_v54, 0.0  ;;  %v698_v60 = vmul.f32 0.2, %v388_v54  ;;  %vm666_vm5 = vcmp.gt.f32.partialorder %v516_v55, 0.0  ;;  %v730_v61 = vmul.f32 0.2, %v516_v55 }
  0xea   :  { %v759_v62 = vsel %vm631_vm2, %v377_v49, %v695_v57  ;;  %v380_v0 = vadd.f32 %v1826_v40, %v379_v58  ;;  %v508_v1 = vadd.f32 %v1826_v40, %v507_v59  ;;  %v1569_v2 = vpop.f32.mrf.mxu0  ;;  %v1601_v3 = vpop.f32.mrf.mxu1  ;;  %v791_v15 = vsel %vm663_vm3, %v505_v50, %v727_v63 }
  0xeb   :  { %v762_v4 = vsel %vm634_vm4, %v388_v54, %v698_v60  ;;  %v794_v5 = vsel %vm666_vm5, %v516_v55, %v730_v61  ;;  %v401_v6 = vadd.f32 %v1569_v2, %v1826_v40  ;;  %v529_v7 = vadd.f32 %v1601_v3, %v1826_v40 }
  0xec   :  { %v1324_v8 = vpack.c.bf16 %v762_v4, %v761_v53  ;;  %v1404_v9 = vpack.c.bf16 %v794_v5, %v793_v56  ;;  %vm632_vm6 = vcmp.gt.f32.partialorder %v380_v0, 0.0  ;;  %v696_v10 = vmul.f32 0.2, %v380_v0  ;;  %v392_v11 = vpop.f32.mrf.mxu0  ;;  %v520_v12 = vpop.f32.mrf.mxu1 }
  0xed   :  { %vm664_vm7 = vcmp.gt.f32.partialorder %v508_v1, 0.0  ;;  %v728_v13 = vmul.f32 0.2, %v508_v1  ;;  %vm637_vm8 = vcmp.gt.f32.partialorder %v401_v6, 0.0  ;;  %v701_v14 = vmul.f32 0.2, %v401_v6 }
  0xee   :  { %1476 = vst [vmem:[%s1994_s3 + $0x8] sm:$0xff] %v1324_v8   ;;  %1492 = vst [vmem:[%s1994_s3 + $0x88] sm:$0xff] %v1404_v9   ;;  %v760_v16 = vsel %vm632_vm6, %v380_v0, %v696_v10  ;;  %v733_v17 = vmul.f32 0.2, %v529_v7  ;;  %v393_v18 = vadd.f32 %v1826_v40, %v392_v11  ;;  %v1570_v19 = vpop.f32.mrf.mxu0  ;;  %v1602_v20 = vpop.f32.mrf.mxu1  ;;  %vm669_vm9 = vcmp.gt.f32.partialorder %v529_v7, 0.0 }
  0xef   :  { %v1319_v21 = vpack.c.bf16 %v760_v16, %v759_v62  ;;  %v792_v22 = vsel %vm664_vm7, %v508_v1, %v728_v13  ;;  %v521_v23 = vadd.f32 %v1826_v40, %v520_v12  ;;  %v765_v25 = vsel %vm637_vm8, %v401_v6, %v701_v14 }
  0xf0   :  { %v1399_v24 = vpack.c.bf16 %v792_v22, %v791_v15  ;;  %vm635_vm10 = vcmp.gt.f32.partialorder %v393_v18, 0.0  ;;  %v699_v26 = vmul.f32 0.2, %v393_v18  ;;  %v395_v27 = vpop.f32.mrf.mxu0  ;;  %v523_v28 = vpop.f32.mrf.mxu1  ;;  %v404_v30 = vadd.f32 %v1570_v19, %v1826_v40 }
  0xf1   :  { %1320 = vst [vmem:[%s1994_s3] sm:$0xff] %v1319_v21   ;;  %vm667_vm11 = vcmp.gt.f32.partialorder %v521_v23, 0.0  ;;  %v731_v29 = vmul.f32 0.2, %v521_v23  ;;  %v532_v31 = vadd.f32 %v1602_v20, %v1826_v40  ;;  %v797_v32 = vsel %vm669_vm9, %v529_v7, %v733_v17 }
  0xf2   :  { %1491 = vst [vmem:[%s1994_s3 + $0x80] sm:$0xff] %v1399_v24   ;;  %v763_v33 = vsel %vm635_vm10, %v393_v18, %v699_v26  ;;  %v396_v34 = vadd.f32 %v1826_v40, %v395_v27  ;;  %v524_v35 = vadd.f32 %v1826_v40, %v523_v28  ;;  %v1573_v36 = vpop.f32.mrf.mxu0  ;;  %v1605_v37 = vpop.f32.mrf.mxu1  ;;  %vm638_vm12 = vcmp.gt.f32.partialorder %v404_v30, 0.0 }
  0xf3   :  { %v795_v38 = vsel %vm667_vm11, %v521_v23, %v731_v29  ;;  %v702_v39 = vmul.f32 0.2, %v404_v30  ;;  %vm670_vm13 = vcmp.gt.f32.partialorder %v532_v31, 0.0  ;;  %v734_v41 = vmul.f32 0.2, %v532_v31 }
  0xf4   :  { %vm636_vm14 = vcmp.gt.f32.partialorder %v396_v34, 0.0  ;;  %v700_v42 = vmul.f32 0.2, %v396_v34  ;;  %vm668_vm15 = vcmp.gt.f32.partialorder %v524_v35, 0.0  ;;  %v408_v43 = vpop.f32.mrf.mxu0  ;;  %v536_v44 = vpop.f32.mrf.mxu1  ;;  %v732_v46 = vmul.f32 0.2, %v524_v35 }
  0xf5   :  { %v766_v45 = vsel %vm638_vm12, %v404_v30, %v702_v39  ;;  %v417_v47 = vadd.f32 %v1573_v36, %v1826_v40  ;;  %v545_v48 = vadd.f32 %v1605_v37, %v1826_v40  ;;  %v798_v50 = vsel %vm670_vm13, %v532_v31, %v734_v41 }
  0xf6   :  { %v1334_v49 = vpack.c.bf16 %v766_v45, %v765_v25  ;;  %v764_v51 = vsel %vm636_vm14, %v396_v34, %v700_v42  ;;  %v409_v52 = vadd.f32 %v1826_v40, %v408_v43  ;;  %v1574_v53 = vpop.f32.mrf.mxu0  ;;  %v1606_v54 = vpop.f32.mrf.mxu1  ;;  %v1414_v55 = vpack.c.bf16 %v798_v50, %v797_v32 }
  0xf7   :  { %v1329_v56 = vpack.c.bf16 %v764_v51, %v763_v33  ;;  %v796_v57 = vsel %vm668_vm15, %v524_v35, %v732_v46  ;;  %vm641_vm0 = vcmp.gt.f32.partialorder %v417_v47, 0.0  ;;  %v705_v59 = vmul.f32 0.2, %v417_v47 }
  0xf8   :  { %1478 = vst [vmem:[%s1994_s3 + $0x18] sm:$0xff] %v1334_v49   ;;  %v1409_v58 = vpack.c.bf16 %v796_v57, %v795_v38  ;;  %vm673_vm1 = vcmp.gt.f32.partialorder %v545_v48, 0.0  ;;  %v737_v60 = vmul.f32 0.2, %v545_v48  ;;  %v411_v61 = vpop.f32.mrf.mxu0  ;;  %v539_v62 = vpop.f32.mrf.mxu1  ;;  %1494 = vst [vmem:[%s1994_s3 + $0x98] sm:$0xff] %v1414_v55   ;;  %vm639_vm2 = vcmp.gt.f32.partialorder %v409_v52, 0.0 }
  0xf9   :  { %1477 = vst [vmem:[%s1994_s3 + $0x10] sm:$0xff] %v1329_v56   ;;  %v703_v63 = vmul.f32 0.2, %v409_v52  ;;  %v537_v0 = vadd.f32 %v1826_v40, %v536_v44  ;;  %v420_v1 = vadd.f32 %v1574_v53, %v1826_v40  ;;  %v769_v2 = vsel %vm641_vm0, %v417_v47, %v705_v59 }
  0xfa   :  { %1493 = vst [vmem:[%s1994_s3 + $0x90] sm:$0xff] %v1409_v58   ;;  %v801_v3 = vsel %vm673_vm1, %v545_v48, %v737_v60  ;;  %v548_v4 = vadd.f32 %v1606_v54, %v1826_v40  ;;  %v412_v5 = vadd.f32 %v1826_v40, %v411_v61  ;;  %v1577_v6 = vpop.f32.mrf.mxu0  ;;  %v1609_v7 = vpop.f32.mrf.mxu1  ;;  %v540_v16 = vadd.f32 %v1826_v40, %v539_v62 }
  0xfb   :  { %v767_v8 = vsel %vm639_vm2, %v409_v52, %v703_v63  ;;  %vm671_vm3 = vcmp.gt.f32.partialorder %v537_v0, 0.0  ;;  %v735_v9 = vmul.f32 0.2, %v537_v0  ;;  %vm642_vm4 = vcmp.gt.f32.partialorder %v420_v1, 0.0 }
  0xfc   :  { %v706_v10 = vmul.f32 0.2, %v420_v1  ;;  %vm674_vm5 = vcmp.gt.f32.partialorder %v548_v4, 0.0  ;;  %v738_v11 = vmul.f32 0.2, %v548_v4  ;;  %vm640_vm6 = vcmp.gt.f32.partialorder %v412_v5, 0.0  ;;  %v424_v12 = vpop.f32.mrf.mxu0  ;;  %v552_v13 = vpop.f32.mrf.mxu1 }
  0xfd   :  { %v799_v14 = vsel %vm671_vm3, %v537_v0, %v735_v9  ;;  %v704_v15 = vmul.f32 0.2, %v412_v5  ;;  %v433_v17 = vadd.f32 %v1577_v6, %v1826_v40  ;;  %v561_v20 = vadd.f32 %v1609_v7, %v1826_v40 }
  0xfe   :  { %v770_v18 = vsel %vm642_vm4, %v420_v1, %v706_v10  ;;  %v802_v19 = vsel %vm674_vm5, %v548_v4, %v738_v11  ;;  %v425_v21 = vadd.f32 %v1826_v40, %v424_v12  ;;  %v1578_v22 = vpop.f32.mrf.mxu0  ;;  %v1610_v23 = vpop.f32.mrf.mxu1  ;;  %vm672_vm7 = vcmp.gt.f32.partialorder %v540_v16, 0.0 }
  0xff   :  { %v1344_v24 = vpack.c.bf16 %v770_v18, %v769_v2  ;;  %v1424_v25 = vpack.c.bf16 %v802_v19, %v801_v3  ;;  %v768_v26 = vsel %vm640_vm6, %v412_v5, %v704_v15  ;;  %v736_v28 = vmul.f32 0.2, %v540_v16 }
 0x100   :  { %v1339_v27 = vpack.c.bf16 %v768_v26, %v767_v8  ;;  %vm645_vm8 = vcmp.gt.f32.partialorder %v433_v17, 0.0  ;;  %v709_v29 = vmul.f32 0.2, %v433_v17  ;;  %v427_v30 = vpop.f32.mrf.mxu0  ;;  %v555_v31 = vpop.f32.mrf.mxu1  ;;  %vm677_vm9 = vcmp.gt.f32.partialorder %v561_v20, 0.0 }
 0x101   :  { %1480 = vst [vmem:[%s1994_s3 + $0x28] sm:$0xff] %v1344_v24   ;;  %1496 = vst [vmem:[%s1994_s3 + $0xa8] sm:$0xff] %v1424_v25   ;;  %v741_v32 = vmul.f32 0.2, %v561_v20  ;;  %vm643_vm10 = vcmp.gt.f32.partialorder %v425_v21, 0.0  ;;  %v800_v34 = vsel %vm672_vm7, %v540_v16, %v736_v28  ;;  %v553_v36 = vadd.f32 %v1826_v40, %v552_v13 }
 0x102   :  { %v707_v33 = vmul.f32 0.2, %v425_v21  ;;  %1479 = vst [vmem:[%s1994_s3 + $0x20] sm:$0xff] %v1339_v27   ;;  %v773_v35 = vsel %vm645_vm8, %v433_v17, %v709_v29  ;;  %v436_v37 = vadd.f32 %v1578_v22, %v1826_v40  ;;  %v1581_v38 = vpop.f32.mrf.mxu0  ;;  %v1613_v39 = vpop.f32.mrf.mxu1  ;;  %v1419_v41 = vpack.c.bf16 %v800_v34, %v799_v14 }
 0x103   :  { %v805_v42 = vsel %vm677_vm9, %v561_v20, %v741_v32  ;;  %v564_v44 = vadd.f32 %v1610_v23, %v1826_v40  ;;  %vm675_vm11 = vcmp.gt.f32.partialorder %v553_v36, 0.0  ;;  %v739_v45 = vmul.f32 0.2, %v553_v36 }
 0x104   :  { %v771_v43 = vsel %vm643_vm10, %v425_v21, %v707_v33  ;;  %vm646_vm12 = vcmp.gt.f32.partialorder %v436_v37, 0.0  ;;  %v710_v46 = vmul.f32 0.2, %v436_v37  ;;  %v440_v47 = vpop.f32.mrf.mxu0  ;;  %v568_v48 = vpop.f32.mrf.mxu1  ;;  %1495 = vst [vmem:[%s1994_s3 + $0xa0] sm:$0xff] %v1419_v41   ;;  %v428_v50 = vadd.f32 %v1826_v40, %v427_v30 }
 0x105   :  { %vm678_vm13 = vcmp.gt.f32.partialorder %v564_v44, 0.0  ;;  %v742_v49 = vmul.f32 0.2, %v564_v44  ;;  %v556_v51 = vadd.f32 %v1826_v40, %v555_v31  ;;  %v803_v52 = vsel %vm675_vm11, %v553_v36, %v739_v45 }
 0x106   :  { %v774_v53 = vsel %vm646_vm12, %v436_v37, %v710_v46  ;;  %v449_v54 = vadd.f32 %v1581_v38, %v1826_v40  ;;  %v577_v55 = vadd.f32 %v1613_v39, %v1826_v40  ;;  %v1582_v56 = vpop.f32.mrf.mxu0  ;;  %v1614_v57 = vpop.f32.mrf.mxu1  ;;  %vm644_vm14 = vcmp.gt.f32.partialorder %v428_v50, 0.0 }
 0x107   :  { %v1354_v58 = vpack.c.bf16 %v774_v53, %v773_v35  ;;  %v806_v59 = vsel %vm678_vm13, %v564_v44, %v742_v49  ;;  %v708_v60 = vmul.f32 0.2, %v428_v50  ;;  %vm676_vm15 = vcmp.gt.f32.partialorder %v556_v51, 0.0 }
 0x108   :  { %v1434_v61 = vpack.c.bf16 %v806_v59, %v805_v42  ;;  %v740_v62 = vmul.f32 0.2, %v556_v51  ;;  %vm649_vm0 = vcmp.gt.f32.partialorder %v449_v54, 0.0  ;;  %v443_v63 = vpop.f32.mrf.mxu0  ;;  %v571_v0 = vpop.f32.mrf.mxu1  ;;  %v713_v2 = vmul.f32 0.2, %v449_v54 }
 0x109   :  { %1482 = vst [vmem:[%s1994_s3 + $0x38] sm:$0xff] %v1354_v58   ;;  %v772_v1 = vsel %vm644_vm14, %v428_v50, %v708_v60  ;;  %vm681_vm1 = vcmp.gt.f32.partialorder %v577_v55, 0.0  ;;  %v745_v3 = vmul.f32 0.2, %v577_v55  ;;  %v441_v6 = vadd.f32 %v1826_v40, %v440_v47 }
 0x10a   :  { %1498 = vst [vmem:[%s1994_s3 + $0xb8] sm:$0xff] %v1434_v61   ;;  %v1349_v4 = vpack.c.bf16 %v772_v1, %v771_v43  ;;  %v804_v5 = vsel %vm676_vm15, %v556_v51, %v740_v62  ;;  %v569_v7 = vadd.f32 %v1826_v40, %v568_v48  ;;  %v1585_v8 = vpop.f32.mrf.mxu0  ;;  %v1617_v9 = vpop.f32.mrf.mxu1  ;;  %v777_v11 = vsel %vm649_vm0, %v449_v54, %v713_v2 }
 0x10b   :  { %v1429_v10 = vpack.c.bf16 %v804_v5, %v803_v52  ;;  %v809_v12 = vsel %vm681_vm1, %v577_v55, %v745_v3  ;;  %v452_v13 = vadd.f32 %v1582_v56, %v1826_v40  ;;  %vm647_vm2 = vcmp.gt.f32.partialorder %v441_v6, 0.0 }
 0x10c   :  { %1481 = vst [vmem:[%s1994_s3 + $0x30] sm:$0xff] %v1349_v4   ;;  %v711_v14 = vmul.f32 0.2, %v441_v6  ;;  %vm679_vm3 = vcmp.gt.f32.partialorder %v569_v7, 0.0  ;;  %v743_v15 = vmul.f32 0.2, %v569_v7  ;;  %v456_v16 = vpop.f32.mrf.mxu0  ;;  %v584_v17 = vpop.f32.mrf.mxu1  ;;  %v580_v19 = vadd.f32 %v1614_v57, %v1826_v40 }
 0x10d   :  { %1497 = vst [vmem:[%s1994_s3 + $0xb0] sm:$0xff] %v1429_v10   ;;  %vm650_vm4 = vcmp.gt.f32.partialorder %v452_v13, 0.0  ;;  %v714_v18 = vmul.f32 0.2, %v452_v13  ;;  %v444_v20 = vadd.f32 %v1826_v40, %v443_v63  ;;  %v572_v23 = vadd.f32 %v1826_v40, %v571_v0 }
 0x10e   :  { %v775_v21 = vsel %vm647_vm2, %v441_v6, %v711_v14  ;;  %v807_v22 = vsel %vm679_vm3, %v569_v7, %v743_v15  ;;  %v465_v24 = vadd.f32 %v1585_v8, %v1826_v40  ;;  %v1586_v25 = vpop.f32.mrf.mxu0  ;;  %v1618_v26 = vpop.f32.mrf.mxu1  ;;  %vm682_vm5 = vcmp.gt.f32.partialorder %v580_v19, 0.0 }
 0x10f   :  { %v778_v27 = vsel %vm650_vm4, %v452_v13, %v714_v18  ;;  %v746_v28 = vmul.f32 0.2, %v580_v19  ;;  %vm648_vm6 = vcmp.gt.f32.partialorder %v444_v20, 0.0  ;;  %v712_v30 = vmul.f32 0.2, %v444_v20 }
 0x110   :  { %v1364_v29 = vpack.c.bf16 %v778_v27, %v777_v11  ;;  %vm680_vm7 = vcmp.gt.f32.partialorder %v572_v23, 0.0  ;;  %v744_v31 = vmul.f32 0.2, %v572_v23  ;;  %v459_v32 = vpop.f32.mrf.mxu0  ;;  %v587_v33 = vpop.f32.mrf.mxu1  ;;  %vm653_vm8 = vcmp.gt.f32.partialorder %v465_v24, 0.0 }
 0x111   :  { %v810_v34 = vsel %vm682_vm5, %v580_v19, %v746_v28  ;;  %v717_v35 = vmul.f32 0.2, %v465_v24  ;;  %v593_v36 = vadd.f32 %v1617_v9, %v1826_v40  ;;  %v776_v38 = vsel %vm648_vm6, %v444_v20, %v712_v30 }
 0x112   :  { %1484 = vst [vmem:[%s1994_s3 + $0x48] sm:$0xff] %v1364_v29   ;;  %v1444_v37 = vpack.c.bf16 %v810_v34, %v809_v12  ;;  %v808_v39 = vsel %vm680_vm7, %v572_v23, %v744_v31  ;;  %v457_v41 = vadd.f32 %v1826_v40, %v456_v16  ;;  %v1589_v42 = vpop.f32.mrf.mxu0  ;;  %v1621_v43 = vpop.f32.mrf.mxu1  ;;  %v1359_v44 = vpack.c.bf16 %v776_v38, %v775_v21 }
 0x113   :  { %v1439_v45 = vpack.c.bf16 %v808_v39, %v807_v22  ;;  %v781_v46 = vsel %vm653_vm8, %v465_v24, %v717_v35  ;;  %vm685_vm9 = vcmp.gt.f32.partialorder %v593_v36, 0.0  ;;  %v749_v47 = vmul.f32 0.2, %v593_v36 }
 0x114   :  { %1500 = vst [vmem:[%s1994_s3 + $0xc8] sm:$0xff] %v1444_v37   ;;  %vm651_vm10 = vcmp.gt.f32.partialorder %v457_v41, 0.0  ;;  %v715_v48 = vmul.f32 0.2, %v457_v41  ;;  %v585_v49 = vadd.f32 %v1826_v40, %v584_v17  ;;  %v472_v50 = vpop.f32.mrf.mxu0  ;;  %v600_v51 = vpop.f32.mrf.mxu1  ;;  %1483 = vst [vmem:[%s1994_s3 + $0x40] sm:$0xff] %v1359_v44   ;;  %v468_v52 = vadd.f32 %v1586_v25, %v1826_v40 }
 0x115   :  { %1499 = vst [vmem:[%s1994_s3 + $0xc0] sm:$0xff] %v1439_v45   ;;  %v596_v53 = vadd.f32 %v1618_v26, %v1826_v40  ;;  %v460_v54 = vadd.f32 %v1826_v40, %v459_v32  ;;  %v588_v55 = vadd.f32 %v1826_v40, %v587_v33  ;;  %v813_v56 = vsel %vm685_vm9, %v593_v36, %v749_v47 }
 0x116   :  { %v779_v57 = vsel %vm651_vm10, %v457_v41, %v715_v48  ;;  %vm683_vm11 = vcmp.gt.f32.partialorder %v585_v49, 0.0  ;;  %v747_v58 = vmul.f32 0.2, %v585_v49  ;;  %v1590_v59 = vpop.f32.mrf.mxu0  ;;  %v1622_v60 = vpop.f32.mrf.mxu1  ;;  %vm654_vm12 = vcmp.gt.f32.partialorder %v468_v52, 0.0 }
 0x117   :  { %v718_v61 = vmul.f32 0.2, %v468_v52  ;;  %vm686_vm13 = vcmp.gt.f32.partialorder %v596_v53, 0.0  ;;  %v750_v62 = vmul.f32 0.2, %v596_v53  ;;  %vm652_vm14 = vcmp.gt.f32.partialorder %v460_v54, 0.0 }
 0x118   :  { %v811_v63 = vsel %vm683_vm11, %v585_v49, %v747_v58  ;;  %v716_v0 = vmul.f32 0.2, %v460_v54  ;;  %vm684_vm15 = vcmp.gt.f32.partialorder %v588_v55, 0.0  ;;  %v475_v1 = vpop.f32.mrf.mxu0  ;;  %v603_v2 = vpop.f32.mrf.mxu1  ;;  %v748_v5 = vmul.f32 0.2, %v588_v55 }
 0x119   :  { %v782_v3 = vsel %vm654_vm12, %v468_v52, %v718_v61  ;;  %v814_v4 = vsel %vm686_vm13, %v596_v53, %v750_v62  ;;  %v481_v6 = vadd.f32 %v1589_v42, %v1826_v40  ;;  %v609_v10 = vadd.f32 %v1621_v43, %v1826_v40 }
 0x11a   :  { %v1374_v7 = vpack.c.bf16 %v782_v3, %v781_v46  ;;  %v1454_v8 = vpack.c.bf16 %v814_v4, %v813_v56  ;;  %v780_v9 = vsel %vm652_vm14, %v460_v54, %v716_v0  ;;  %v1593_v11 = vpop.f32.mrf.mxu0  ;;  %v1625_v12 = vpop.f32.mrf.mxu1  ;;  %v812_v14 = vsel %vm684_vm15, %v588_v55, %v748_v5 }
 0x11b   :  { %v1369_v13 = vpack.c.bf16 %v780_v9, %v779_v57  ;;  %vm657_vm0 = vcmp.gt.f32.partialorder %v481_v6, 0.0  ;;  %v721_v15 = vmul.f32 0.2, %v481_v6  ;;  %v1449_v16 = vpack.c.bf16 %v812_v14, %v811_v63 }
 0x11c   :  { %1486 = vst [vmem:[%s1994_s3 + $0x58] sm:$0xff] %v1374_v7   ;;  %1502 = vst [vmem:[%s1994_s3 + $0xd8] sm:$0xff] %v1454_v8   ;;  %vm689_vm1 = vcmp.gt.f32.partialorder %v609_v10, 0.0  ;;  %v753_v17 = vmul.f32 0.2, %v609_v10  ;;  %v473_v18 = vadd.f32 %v1826_v40, %v472_v50  ;;  %v601_v19 = vadd.f32 %v1826_v40, %v600_v51  ;;  %v488_v25 = vpop.f32.mrf.mxu0  ;;  %v616_v26 = vpop.f32.mrf.mxu1 }
 0x11d   :  { %1485 = vst [vmem:[%s1994_s3 + $0x50] sm:$0xff] %v1369_v13   ;;  %v484_v20 = vadd.f32 %v1590_v59, %v1826_v40  ;;  %v612_v21 = vadd.f32 %v1622_v60, %v1826_v40  ;;  %1501 = vst [vmem:[%s1994_s3 + $0xd0] sm:$0xff] %v1449_v16   ;;  %v785_v22 = vsel %vm657_vm0, %v481_v6, %v721_v15 }
 0x11e   :  { %vm655_vm2 = vcmp.gt.f32.partialorder %v473_v18, 0.0  ;;  %v719_v23 = vmul.f32 0.2, %v473_v18  ;;  %v476_v24 = vadd.f32 %v1826_v40, %v475_v1  ;;  %v817_v27 = vsel %vm689_vm1, %v609_v10, %v753_v17  ;;  %v1594_v39 = vpop.f32.mrf.mxu0  ;;  %v1626_v41 = vpop.f32.mrf.mxu1 }
 0x11f   :  { %vm687_vm3 = vcmp.gt.f32.partialorder %v601_v19, 0.0  ;;  %vm658_vm4 = vcmp.gt.f32.partialorder %v484_v20, 0.0  ;;  %v722_v28 = vmul.f32 0.2, %v484_v20  ;;  %v751_v29 = vmul.f32 0.2, %v601_v19 }
 0x120   :  { %vm690_vm5 = vcmp.gt.f32.partialorder %v612_v21, 0.0  ;;  %v754_v30 = vmul.f32 0.2, %v612_v21  ;;  %vm656_vm6 = vcmp.gt.f32.partialorder %v476_v24, 0.0  ;;  %v783_v31 = vsel %vm655_vm2, %v473_v18, %v719_v23  ;;  %v491_v55 = vpop.f32.mrf.mxu0  ;;  %v619_v56 = vpop.f32.mrf.mxu1 }
 0x121   :  { %v786_v32 = vsel %vm658_vm4, %v484_v20, %v722_v28  ;;  %v720_v33 = vmul.f32 0.2, %v476_v24  ;;  %v604_v34 = vadd.f32 %v1826_v40, %v603_v2  ;;  %v497_v37 = vadd.f32 %v1593_v11, %v1826_v40 }
 0x122   :  { %v1384_v35 = vpack.c.bf16 %v786_v32, %v785_v22  ;;  %v818_v36 = vsel %vm690_vm5, %v612_v21, %v754_v30  ;;  %v625_v38 = vadd.f32 %v1625_v12, %v1826_v40  ;;  %v815_v45 = vsel %vm687_vm3, %v601_v19, %v751_v29 }
 0x123   :  { %v1464_v42 = vpack.c.bf16 %v818_v36, %v817_v27  ;;  %v784_v43 = vsel %vm656_vm6, %v476_v24, %v720_v33  ;;  %vm688_vm7 = vcmp.gt.f32.partialorder %v604_v34, 0.0  ;;  %v752_v44 = vmul.f32 0.2, %v604_v34 }
 0x124   :  { %1488 = vst [vmem:[%s1994_s3 + $0x68] sm:$0xff] %v1384_v35   ;;  %v1379_v46 = vpack.c.bf16 %v784_v43, %v783_v31  ;;  %vm661_vm8 = vcmp.gt.f32.partialorder %v497_v37, 0.0  ;;  %v725_v47 = vmul.f32 0.2, %v497_v37  ;;  %vm693_vm9 = vcmp.gt.f32.partialorder %v625_v38, 0.0 }
 0x125   :  { %1504 = vst [vmem:[%s1994_s3 + $0xe8] sm:$0xff] %v1464_v42   ;;  %v816_v48 = vsel %vm688_vm7, %v604_v34, %v752_v44  ;;  %v757_v49 = vmul.f32 0.2, %v625_v38  ;;  %v489_v50 = vadd.f32 %v1826_v40, %v488_v25  ;;  %v617_v52 = vadd.f32 %v1826_v40, %v616_v26 }
 0x126   :  { %1487 = vst [vmem:[%s1994_s3 + $0x60] sm:$0xff] %v1379_v46   ;;  %v1459_v51 = vpack.c.bf16 %v816_v48, %v815_v45  ;;  %v500_v53 = vadd.f32 %v1594_v39, %v1826_v40  ;;  %v628_v54 = vadd.f32 %v1626_v41, %v1826_v40  ;;  %v789_v57 = vsel %vm661_vm8, %v497_v37, %v725_v47 }
 0x127   :  { %v821_v58 = vsel %vm693_vm9, %v625_v38, %v757_v49  ;;  %v723_v60 = vmul.f32 0.2, %v489_v50  ;;  %v492_v62 = vadd.f32 %v1826_v40, %v491_v55  ;;  %v620_v63 = vadd.f32 %v1826_v40, %v619_v56 }
 0x128   :  { %1503 = vst [vmem:[%s1994_s3 + $0xe0] sm:$0xff] %v1459_v51   ;;  %vm662_vm10 = vcmp.gt.f32.partialorder %v500_v53, 0.0  ;;  %v726_v59 = vmul.f32 0.2, %v500_v53  ;;  %vm694_vm11 = vcmp.gt.f32.partialorder %v628_v54, 0.0  ;;  %vm659_vm12 = vcmp.gt.f32.partialorder %v489_v50, 0.0 }
 0x129   :  { %v758_v61 = vmul.f32 0.2, %v628_v54  ;;  %vm691_vm13 = vcmp.gt.f32.partialorder %v617_v52, 0.0  ;;  %v755_v0 = vmul.f32 0.2, %v617_v52  ;;  %vm660_vm14 = vcmp.gt.f32.partialorder %v492_v62, 0.0 }
 0x12a   :  { %v790_v1 = vsel %vm662_vm10, %v500_v53, %v726_v59  ;;  %v724_v4 = vmul.f32 0.2, %v492_v62  ;;  %vm692_vm15 = vcmp.gt.f32.partialorder %v620_v63, 0.0  ;;  %v756_v6 = vmul.f32 0.2, %v620_v63 }
 0x12b   :  { %v1394_v2 = vpack.c.bf16 %v790_v1, %v789_v57  ;;  %v822_v3 = vsel %vm694_vm11, %v628_v54, %v758_v61  ;;  %v787_v7 = vsel %vm659_vm12, %v489_v50, %v723_v60  ;;  %v819_v9 = vsel %vm691_vm13, %v617_v52, %v755_v0 }
 0x12c   :  { %v1474_v5 = vpack.c.bf16 %v822_v3, %v821_v58  ;;  %v788_v8 = vsel %vm660_vm14, %v492_v62, %v724_v4  ;;  %v820_v10 = vsel %vm692_vm15, %v620_v63, %v756_v6 }
 0x12d   :  { %1490 = vst [vmem:[%s1994_s3 + $0x78] sm:$0xff] %v1394_v2   ;;  %v1389_v40 = vpack.c.bf16 %v788_v8, %v787_v7  ;;  %v1469_v11 = vpack.c.bf16 %v820_v10, %v819_v9 }
 0x12e   :  { %1506 = vst [vmem:[%s1994_s3 + $0xf8] sm:$0xff] %v1474_v5  }
 0x12f   :  { %1489 = vst [vmem:[%s1994_s3 + $0x70] sm:$0xff] %v1389_v40   ;;  %1505 = vst [vmem:[%s1994_s3 + $0xf0] sm:$0xff] %v1469_v11  }

// kernel: _lambda_.6
= control target key start
LH: loop header
LB: loop body
LE: loop exit
PB: predicated region body
PF: predicated region fallthrough
CT: control target
= control target key end

     0   :  { %s998_s1 = inlined_call_operand.vmem [shape: bf16[256,128], index: 1, kind: input, shape index: {}]   ;;  %s999_s0 = inlined_call_operand.vmem [shape: bf16[128,256], index: 0, kind: input, shape index: {}]   ;;  %s1000_s2 = inlined_call_operand.vmem [shape: bf16[128,128], index: 2, kind: output, shape index: {0}]   ;;  %s1001_s3 = inlined_call_operand.vmem [shape: f32[8,128], index: 3, kind: output, shape index: {1}]   ;;  %s1002_s4 = inlined_call_operand.vmem [shape: f32[8,128], index: 4, kind: output, shape index: {2}]  }
   0x1   :  { %v783_v0 = vld [vmem:[%s998_s1 + $0x78] sm:$0xff]   ;;  %v785_v2 = vld [vmem:[%s998_s1 + $0x70] sm:$0xff]   ;;  %v787_v4 = vld [vmem:[%s998_s1 + $0x68] sm:$0xff]  }
   0x2   :  { %v784_v1 = vld [vmem:[%s998_s1 + $0x38] sm:$0xff]   ;;  %703 = vmatprep.subr.bf16.mxu0 %v783_v0  ;;  %767 = vmatprep.subr.bf16.mxu1 %v783_v0  ;;  %v786_v3 = vld [vmem:[%s998_s1 + $0x30] sm:$0xff]   ;;  %v788_v5 = vld [vmem:[%s998_s1 + $0x28] sm:$0xff]  }
   0x3   :  { %704 = vmatpush3.bf16.msra.mxu0 %v784_v1  ;;  %775 = vmatpush3.bf16.msra.mxu1 %v784_v1  ;;  %v789_v6 = vld [vmem:[%s998_s1 + $0x60] sm:$0xff]   ;;  %v791_v8 = vld [vmem:[%s998_s1 + $0x58] sm:$0xff]   ;;  %v793_v10 = vld [vmem:[%s998_s1 + $0x50] sm:$0xff]  }
   0x4   :  { %705 = vmatprep.subr.bf16.mxu0 %v785_v2  ;;  %768 = vmatprep.subr.bf16.mxu1 %v785_v2  ;;  %v790_v7 = vld [vmem:[%s998_s1 + $0x20] sm:$0xff]   ;;  %v792_v9 = vld [vmem:[%s998_s1 + $0x18] sm:$0xff]   ;;  %v794_v12 = vld [vmem:[%s998_s1 + $0x10] sm:$0xff]  }
   0x5   :  { %v801_v11 = vld [vmem:[%s999_s0 + $0x4] ss:$8 sps:$4 sm:$0xff]   ;;  %v799_v18 = vld [vmem:[%s999_s0] ss:$8 sps:$4 sm:$0xff]   ;;  %v802_v20 = vld [vmem:[%s999_s0 + $0x14] ss:$8 sps:$4 sm:$0xff]  }
   0x6   :  { %v807_v13 = vld [vmem:[%s999_s0 + $0x44] ss:$8 sps:$4 sm:$0xff]   ;;  %271 = vmatprep.mubr.bf16.mxu0 %v801_v11  ;;  %v805_v19 = vld [vmem:[%s999_s0 + $0x40] ss:$8 sps:$4 sm:$0xff]   ;;  %v811_v21 = vld [vmem:[%s999_s0 + $0x54] ss:$8 sps:$4 sm:$0xff]  }
   0x7   :  { %706 = vmatpush3.bf16.msra.mxu0 %v786_v3  ;;  %776 = vmatpush3.bf16.msra.mxu1 %v786_v3  ;;  %v795_v14 = vld [vmem:[%s998_s1 + $0x48] sm:$0xff]   ;;  %v797_v16 = vld [vmem:[%s998_s1 + $0x40] sm:$0xff]   ;;  %v804_v22 = vld [vmem:[%s999_s0 + $0x10] ss:$8 sps:$4 sm:$0xff]  }
   0x8   :  { %707 = vmatprep.subr.bf16.mxu0 %v787_v4  ;;  %769 = vmatprep.subr.bf16.mxu1 %v787_v4  ;;  %v796_v15 = vld [vmem:[%s998_s1 + $0x8] sm:$0xff]   ;;  %v798_v17 = vld [vmem:[%s998_s1] sm:$0xff]   ;;  %v813_v23 = vld [vmem:[%s999_s0 + $0x50] ss:$8 sps:$4 sm:$0xff]  }
   0x9   :  { %303 = vmatprep.mubr.bf16.mxu1 %v807_v13  ;;  %v808_v24 = vld [vmem:[%s999_s0 + $0x24] ss:$8 sps:$4 sm:$0xff]   ;;  %v810_v26 = vld [vmem:[%s999_s0 + $0x20] ss:$8 sps:$4 sm:$0xff]   ;;  %v814_v28 = vld [vmem:[%s999_s0 + $0x34] ss:$8 sps:$4 sm:$0xff]  }
   0xa   :  { %v817_v25 = vld [vmem:[%s999_s0 + $0x64] ss:$8 sps:$4 sm:$0xff]   ;;  %v819_v27 = vld [vmem:[%s999_s0 + $0x60] ss:$8 sps:$4 sm:$0xff]   ;;  %v820_v29 = vld [vmem:[%s999_s0 + $0x74] ss:$8 sps:$4 sm:$0xff]  }
   0xb   :  { %708 = vmatpush3.bf16.msra.mxu0 %v788_v5  ;;  %777 = vmatpush3.bf16.msra.mxu1 %v788_v5  ;;  %v816_v30 = vld [vmem:[%s999_s0 + $0x30] ss:$8 sps:$4 sm:$0xff]  }
   0xc   :  { %709 = vmatprep.subr.bf16.mxu0 %v789_v6  ;;  %770 = vmatprep.subr.bf16.mxu1 %v789_v6  ;;  %v822_v31 = vld [vmem:[%s999_s0 + $0x70] ss:$8 sps:$4 sm:$0xff]  }
   0xf   :  { %710 = vmatpush3.bf16.msra.mxu0 %v790_v7  ;;  %778 = vmatpush3.bf16.msra.mxu1 %v790_v7 }
  0x10   :  { %711 = vmatprep.subr.bf16.mxu0 %v791_v8  ;;  %771 = vmatprep.subr.bf16.mxu1 %v791_v8 }
  0x13   :  { %712 = vmatpush3.bf16.msra.mxu0 %v792_v9  ;;  %779 = vmatpush3.bf16.msra.mxu1 %v792_v9 }
  0x14   :  { %713 = vmatprep.subr.bf16.mxu0 %v793_v10  ;;  %772 = vmatprep.subr.bf16.mxu1 %v793_v10 }
  0x17   :  { %714 = vmatpush3.bf16.msra.mxu0 %v794_v12  ;;  %780 = vmatpush3.bf16.msra.mxu1 %v794_v12 }
  0x18   :  { %715 = vmatprep.subr.bf16.mxu0 %v795_v14  ;;  %773 = vmatprep.subr.bf16.mxu1 %v795_v14 }
  0x1b   :  { %716 = vmatpush3.bf16.msra.mxu0 %v796_v15  ;;  %781 = vmatpush3.bf16.msra.mxu1 %v796_v15 }
  0x1c   :  { %717 = vmatprep.subr.bf16.mxu0 %v797_v16  ;;  %774 = vmatprep.subr.bf16.mxu1 %v797_v16 }
  0x1f   :  { %718 = vmatpush3.bf16.msra.mxu0 %v798_v17  ;;  %782 = vmatpush3.bf16.msra.mxu1 %v798_v17 }
  0x22   :  { %272 = vmatmul.mubr.bf16.vlgmr.msra.gmra.mxu0 %v799_v18  ;;  %304 = vmatmul.mubr.bf16.vlgmr.msra.gmra.mxu1 %v805_v19 }
  0x23   :  { %279 = vmatprep.mubr.bf16.mxu0 %v802_v20  ;;  %311 = vmatprep.mubr.bf16.mxu1 %v811_v21 }
  0x2a   :  { %280 = vmatmul.mubr.bf16.gmra.mxu0 %v804_v22  ;;  %312 = vmatmul.mubr.bf16.gmra.mxu1 %v813_v23 }
  0x2b   :  { %287 = vmatprep.mubr.bf16.mxu0 %v808_v24  ;;  %319 = vmatprep.mubr.bf16.mxu1 %v817_v25 }
  0x32   :  { %288 = vmatmul.mubr.bf16.gmra.mxu0 %v810_v26  ;;  %320 = vmatmul.mubr.bf16.gmra.mxu1 %v819_v27 }
  0x33   :  { %295 = vmatprep.mubr.bf16.mxu0 %v814_v28  ;;  %327 = vmatprep.mubr.bf16.mxu1 %v820_v29 }
  0x3a   :  { %296 = vmatmul.mubr.bf16.gmra.mxu0 %v816_v30  ;;  %328 = vmatmul.mubr.bf16.gmra.mxu1 %v822_v31 }
  0xe2   :  { %v719_v32 = vpop.f32.mrf.mxu0  ;;  %v743_v33 = vpop.f32.mrf.mxu1 }
  0xe4   :  { %v720_v34 = vpop.f32.mrf.mxu0  ;;  %v744_v35 = vpop.f32.mrf.mxu1 }
  0xe5   :  { %v944_v38 = vadd.f32 %v744_v35, %v743_v33  ;;  %v721_v41 = vadd.f32 %v720_v34, %v719_v32 }
  0xe6   :  { %v722_v36 = vpop.f32.mrf.mxu0  ;;  %v746_v37 = vpop.f32.mrf.mxu1 }
  0xe7   :  { %v536_v1 = vmul.f32 %v721_v41, %v721_v41 }
  0xe8   :  { %v723_v39 = vpop.f32.mrf.mxu0  ;;  %v747_v40 = vpop.f32.mrf.mxu1 }
  0xe9   :  { %v724_v42 = vadd.f32 %v723_v39, %v722_v36  ;;  %v946_v43 = vadd.f32 %v747_v40, %v746_v37 }
  0xea   :  { %v725_v44 = vpop.f32.mrf.mxu0  ;;  %v749_v45 = vpop.f32.mrf.mxu1 }
  0xeb   :  { %v659_v46 = vpack.c.bf16 %v724_v42, %v721_v41  ;;  %v679_v47 = vpack.c.bf16 %v946_v43, %v944_v38  ;;  %v537_v62 = vmul.f32 %v724_v42, %v724_v42  ;;  %v515_v6 = vadd.f32 %v724_v42, %v721_v41 }
  0xec   :  { %v726_v48 = vpop.f32.mrf.mxu0  ;;  %v750_v49 = vpop.f32.mrf.mxu1 }
  0xed   :  { %660 = vst [vmem:[%s1000_s2] sm:$0xff] %v659_v46   ;;  %699 = vst [vmem:[%s1000_s2 + $0x20] sm:$0xff] %v679_v47   ;;  %v956_v52 = vadd.f32 %v750_v49, %v749_v45  ;;  %v727_v55 = vadd.f32 %v726_v48, %v725_v44  ;;  %v552_v8 = vadd.f32 %v537_v62, %v536_v1 }
  0xee   :  { %v728_v50 = vpop.f32.mrf.mxu0  ;;  %v752_v51 = vpop.f32.mrf.mxu1  ;;  %v544_v47 = vmul.f32 %v944_v38, %v944_v38 }
  0xef   :  { %v538_v2 = vmul.f32 %v727_v55, %v727_v55  ;;  %v516_v12 = vadd.f32 %v727_v55, %v515_v6 }
  0xf0   :  { %v729_v53 = vpop.f32.mrf.mxu0  ;;  %v753_v54 = vpop.f32.mrf.mxu1 }
  0xf1   :  { %v730_v56 = vadd.f32 %v729_v53, %v728_v50  ;;  %v958_v57 = vadd.f32 %v753_v54, %v752_v51  ;;  %v553_v15 = vadd.f32 %v552_v8, %v538_v2  ;;  %v545_v50 = vmul.f32 %v946_v43, %v946_v43 }
  0xf2   :  { %v731_v58 = vpop.f32.mrf.mxu0  ;;  %v755_v59 = vpop.f32.mrf.mxu1  ;;  %v546_v54 = vmul.f32 %v956_v52, %v956_v52 }
  0xf3   :  { %v664_v60 = vpack.c.bf16 %v730_v56, %v727_v55  ;;  %v684_v61 = vpack.c.bf16 %v958_v57, %v956_v52  ;;  %v539_v9 = vmul.f32 %v730_v56, %v730_v56  ;;  %v517_v19 = vadd.f32 %v730_v56, %v516_v12 }
  0xf4   :  { %v732_v63 = vpop.f32.mrf.mxu0  ;;  %v756_v0 = vpop.f32.mrf.mxu1 }
  0xf5   :  { %696 = vst [vmem:[%s1000_s2 + $0x8] sm:$0xff] %v664_v60   ;;  %700 = vst [vmem:[%s1000_s2 + $0x28] sm:$0xff] %v684_v61   ;;  %v733_v3 = vadd.f32 %v732_v63, %v731_v58  ;;  %v757_v7 = vadd.f32 %v756_v0, %v755_v59  ;;  %v554_v22 = vadd.f32 %v553_v15, %v539_v9  ;;  %v417_v9 = vlaneseq }
  0xf6   :  { %v734_v4 = vpop.f32.mrf.mxu0  ;;  %v758_v5 = vpop.f32.mrf.mxu1 }
  0xf7   :  { %v540_v16 = vmul.f32 %v733_v3, %v733_v3  ;;  %v518_v26 = vadd.f32 %v733_v3, %v517_v19  ;;  %v548_v60 = vmul.f32 %v757_v7, %v757_v7 }
  0xf8   :  { %v735_v10 = vpop.f32.mrf.mxu0  ;;  %v759_v11 = vpop.f32.mrf.mxu1 }
  0xf9   :  { %v736_v13 = vadd.f32 %v735_v10, %v734_v4  ;;  %v760_v14 = vadd.f32 %v759_v11, %v758_v5  ;;  %v555_v28 = vadd.f32 %v554_v22, %v540_v16 }
  0xfa   :  { %v737_v17 = vpop.f32.mrf.mxu0  ;;  %v761_v18 = vpop.f32.mrf.mxu1 }
  0xfb   :  { %v669_v20 = vpack.c.bf16 %v736_v13, %v733_v3  ;;  %v689_v21 = vpack.c.bf16 %v760_v14, %v757_v7  ;;  %v541_v23 = vmul.f32 %v736_v13, %v736_v13  ;;  %v519_v31 = vadd.f32 %v736_v13, %v518_v26 }
  0xfc   :  { %v738_v24 = vpop.f32.mrf.mxu0  ;;  %v762_v25 = vpop.f32.mrf.mxu1  ;;  %v549_v0 = vmul.f32 %v760_v14, %v760_v14  ;;  %v418_v13 = vshrl.u32 %v417_v9, 7 }
  0xfd   :  { %697 = vst [vmem:[%s1000_s2 + $0x10] sm:$0xff] %v669_v20   ;;  %v739_v27 = vadd.f32 %v738_v24, %v737_v17  ;;  %701 = vst [vmem:[%s1000_s2 + $0x30] sm:$0xff] %v689_v21   ;;  %v763_v33 = vadd.f32 %v762_v25, %v761_v18  ;;  %v556_v34 = vadd.f32 %v555_v28, %v541_v23 }
  0xfe   :  { %v740_v29 = vpop.f32.mrf.mxu0  ;;  %v764_v30 = vpop.f32.mrf.mxu1  ;;  %vm573_vm0 = vcmp.eq.s32.totalorder %v418_v13, 0 }
  0xff   :  { %v542_v32 = vmul.f32 %v739_v27, %v739_v27  ;;  %v520_v37 = vadd.f32 %v739_v27, %v519_v31  ;;  %v550_v3 = vmul.f32 %v763_v33, %v763_v33 }
 0x100   :  { %v741_v35 = vpop.f32.mrf.mxu0  ;;  %v765_v36 = vpop.f32.mrf.mxu1 }
 0x101   :  { %v742_v39 = vadd.f32 %v741_v35, %v740_v29  ;;  %v766_v40 = vadd.f32 %v765_v36, %v764_v30  ;;  %v557_v41 = vadd.f32 %v556_v34, %v542_v32 }
 0x103   :  { %v674_v42 = vpack.c.bf16 %v742_v39, %v739_v27  ;;  %v521_v44 = vadd.f32 %v742_v39, %v520_v37  ;;  %v543_v45 = vmul.f32 %v742_v39, %v742_v39  ;;  %v694_v46 = vpack.c.bf16 %v766_v40, %v763_v33 }
 0x104   :  { %v551_v6 = vmul.f32 %v766_v40, %v766_v40 }
 0x105   :  { %698 = vst [vmem:[%s1000_s2 + $0x18] sm:$0xff] %v674_v42   ;;  %v522_v48 = vadd.f32 %v944_v38, %v521_v44  ;;  %v558_v49 = vadd.f32 %v557_v41, %v543_v45  ;;  %702 = vst [vmem:[%s1000_s2 + $0x38] sm:$0xff] %v694_v46   ;;  %v547_v38 = vmul.f32 %v958_v57, %v958_v57 }
 0x107   :  { %v523_v51 = vadd.f32 %v946_v43, %v522_v48  ;;  %v559_v53 = vadd.f32 %v558_v49, %v544_v47 }
 0x109   :  { %v560_v55 = vadd.f32 %v559_v53, %v545_v50  ;;  %v524_v56 = vadd.f32 %v956_v52, %v523_v51 }
 0x10b   :  { %v525_v58 = vadd.f32 %v958_v57, %v524_v56  ;;  %v561_v59 = vadd.f32 %v560_v55, %v546_v54 }
 0x10d   :  { %v526_v61 = vadd.f32 %v757_v7, %v525_v58  ;;  %v562_v62 = vadd.f32 %v561_v59, %v547_v38 }
 0x10f   :  { %v527_v63 = vadd.f32 %v760_v14, %v526_v61  ;;  %v563_v1 = vadd.f32 %v562_v62, %v548_v60 }
 0x111   :  { %v564_v43 = vadd.f32 %v563_v1, %v549_v0  ;;  %v528_v2 = vadd.f32 %v763_v33, %v527_v63 }
 0x113   :  { %v565_v4 = vadd.f32 %v564_v43, %v550_v3  ;;  %v529_v5 = vadd.f32 %v766_v40, %v528_v2 }
 0x115   :  { %v530_v8 = vrot.slane %v529_v5, 4  ;;  %v566_v52 = vadd.f32 %v565_v4, %v551_v6 }
 0x117   :  { %v531_v10 = vadd.f32 %v530_v8, %v529_v5  ;;  %v567_v11 = vrot.slane %v566_v52, 4 }
 0x119   :  { %v532_v12 = vrot.slane %v531_v10, 2  ;;  %v568_v57 = vadd.f32 %v567_v11, %v566_v52 }
 0x11b   :  { %v533_v15 = vadd.f32 %v532_v12, %v531_v10  ;;  %v569_v7 = vrot.slane %v568_v57, 2 }
 0x11d   :  { %v534_v16 = vrot.slane %v533_v15, 1  ;;  %v570_v17 = vadd.f32 %v569_v7, %v568_v57 }
 0x11f   :  { %v535_v14 = vadd.f32 %v534_v16, %v533_v15  ;;  %v571_v18 = vrot.slane %v570_v17, 1 }
 0x121   :  { %v572_v19 = vadd.f32 %v571_v18, %v570_v17  ;;  %v576_v20 = vsel %vm573_vm0, %v535_v14, 0.0 }
 0x122   :  { %577 = vst [vmem:[%s1001_s3] sm:$0xff] %v576_v20 }
 0x123   :  { %v578_v21 = vsel %vm573_vm0, %v572_v19, 0.0 }
 0x124   :  { %579 = vst [vmem:[%s1002_s4] sm:$0xff] %v578_v21 }

// kernel: _lambda_.7
= control target key start
LH: loop header
LB: loop body
LE: loop exit
PB: predicated region body
PF: predicated region fallthrough
CT: control target
= control target key end

     0   :  { %s821_s1 = inlined_call_operand.vmem [shape: bf16[512,128], index: 1, kind: input, shape index: {}]   ;;  %s822_s0 = inlined_call_operand.vmem [shape: bf16[32,512], index: 0, kind: input, shape index: {}]   ;;  %s823_s2 = inlined_call_operand.vmem [shape: bf16[32,128], index: 2, kind: output, shape index: {0}]   ;;  %s824_s3 = inlined_call_operand.vmem [shape: f32[8,128], index: 3, kind: output, shape index: {1}]   ;;  %s825_s4 = inlined_call_operand.vmem [shape: f32[8,128], index: 4, kind: output, shape index: {2}]  }
   0x1   :  { %v620_v0 = vld [vmem:[%s821_s1 + $0x78] sm:$0xff]   ;;  %v624_v4 = vld [vmem:[%s821_s1 + $0x70] sm:$0xff]   ;;  %v628_v8 = vld [vmem:[%s821_s1 + $0x68] sm:$0xff]  }
   0x2   :  { %v621_v1 = vld [vmem:[%s821_s1 + $0xf8] sm:$0xff]   ;;  %564 = vmatprep.subr.bf16.mxu0 %v620_v0  ;;  %v625_v5 = vld [vmem:[%s821_s1 + $0xf0] sm:$0xff]   ;;  %v629_v9 = vld [vmem:[%s821_s1 + $0xe8] sm:$0xff]  }
   0x3   :  { %v622_v2 = vld [vmem:[%s821_s1 + $0x38] sm:$0xff]   ;;  %592 = vmatprep.subr.bf16.mxu1 %v621_v1  ;;  %v626_v6 = vld [vmem:[%s821_s1 + $0x30] sm:$0xff]   ;;  %v630_v10 = vld [vmem:[%s821_s1 + $0x28] sm:$0xff]  }
   0x4   :  { %v623_v3 = vld [vmem:[%s821_s1 + $0xb8] sm:$0xff]   ;;  %565 = vmatpush3.bf16.msra.mxu0 %v622_v2  ;;  %v627_v7 = vld [vmem:[%s821_s1 + $0xb0] sm:$0xff]   ;;  %v631_v11 = vld [vmem:[%s821_s1 + $0xa8] sm:$0xff]  }
   0x5   :  { %593 = vmatpush3.bf16.msra.mxu1 %v623_v3  ;;  %566 = vmatprep.subr.bf16.mxu0 %v624_v4  ;;  %v632_v12 = vld [vmem:[%s821_s1 + $0x60] sm:$0xff]   ;;  %v636_v16 = vld [vmem:[%s821_s1 + $0x58] sm:$0xff]   ;;  %v640_v20 = vld [vmem:[%s821_s1 + $0x50] sm:$0xff]  }
   0x6   :  { %594 = vmatprep.subr.bf16.mxu1 %v625_v5  ;;  %v633_v13 = vld [vmem:[%s821_s1 + $0xe0] sm:$0xff]   ;;  %v637_v17 = vld [vmem:[%s821_s1 + $0xd8] sm:$0xff]   ;;  %v641_v21 = vld [vmem:[%s821_s1 + $0xd0] sm:$0xff]  }
   0x7   :  { %v634_v14 = vld [vmem:[%s821_s1 + $0x20] sm:$0xff]   ;;  %v638_v18 = vld [vmem:[%s821_s1 + $0x18] sm:$0xff]   ;;  %v642_v22 = vld [vmem:[%s821_s1 + $0x10] sm:$0xff]  }
   0x8   :  { %567 = vmatpush3.bf16.msra.mxu0 %v626_v6  ;;  %v635_v15 = vld [vmem:[%s821_s1 + $0xa0] sm:$0xff]   ;;  %v639_v19 = vld [vmem:[%s821_s1 + $0x98] sm:$0xff]   ;;  %v643_v23 = vld [vmem:[%s821_s1 + $0x90] sm:$0xff]  }
   0x9   :  { %595 = vmatpush3.bf16.msra.mxu1 %v627_v7  ;;  %568 = vmatprep.subr.bf16.mxu0 %v628_v8  ;;  %v644_v24 = vld [vmem:[%s821_s1 + $0x48] sm:$0xff]   ;;  %v648_v28 = vld [vmem:[%s821_s1 + $0x40] sm:$0xff]  }
   0xa   :  { %596 = vmatprep.subr.bf16.mxu1 %v629_v9  ;;  %v645_v25 = vld [vmem:[%s821_s1 + $0xc8] sm:$0xff]   ;;  %v649_v29 = vld [vmem:[%s821_s1 + $0xc0] sm:$0xff]  }
   0xb   :  { %v646_v26 = vld [vmem:[%s821_s1 + $0x8] sm:$0xff]   ;;  %v650_v30 = vld [vmem:[%s821_s1] sm:$0xff]  }
   0xc   :  { %569 = vmatpush3.bf16.msra.mxu0 %v630_v10  ;;  %v647_v27 = vld [vmem:[%s821_s1 + $0x88] sm:$0xff]   ;;  %v651_v31 = vld [vmem:[%s821_s1 + $0x80] sm:$0xff]  }
   0xd   :  { %597 = vmatpush3.bf16.msra.mxu1 %v631_v11  ;;  %570 = vmatprep.subr.bf16.mxu0 %v632_v12  ;;  %v652_v32 = vld [vmem:[%s822_s0] ss:$16 sps:$4 sm:$0xff]   ;;  %v654_v33 = vld [vmem:[%s822_s0 + $0x4] ss:$16 sps:$4 sm:$0xff]   ;;  %v655_v34 = vld [vmem:[%s822_s0 + $0x8] ss:$16 sps:$4 sm:$0xff]  }
   0xe   :  { %598 = vmatprep.subr.bf16.mxu1 %v633_v13  ;;  %v657_v35 = vld [vmem:[%s822_s0 + $0xc] ss:$16 sps:$4 sm:$0xff]   ;;  %351 = vmatprep.mubr.bf16.mxu0 %v654_v33  ;;  %v658_v36 = vld [vmem:[%s822_s0 + $0x24] ss:$16 sps:$4 sm:$0xff]   ;;  %v662_v38 = vld [vmem:[%s822_s0 + $0x20] ss:$16 sps:$4 sm:$0xff]  }
   0xf   :  { %400 = vmatprep.mubr.bf16.mxu1 %v657_v35  ;;  %v660_v37 = vld [vmem:[%s822_s0 + $0x2c] ss:$16 sps:$4 sm:$0xff]   ;;  %v663_v39 = vld [vmem:[%s822_s0 + $0x28] ss:$16 sps:$4 sm:$0xff]  }
  0x10   :  { %571 = vmatpush3.bf16.msra.mxu0 %v634_v14 }
  0x11   :  { %599 = vmatpush3.bf16.msra.mxu1 %v635_v15  ;;  %572 = vmatprep.subr.bf16.mxu0 %v636_v16 }
  0x12   :  { %600 = vmatprep.subr.bf16.mxu1 %v637_v17  ;;  %v438_v17 = vlaneseq }
  0x14   :  { %573 = vmatpush3.bf16.msra.mxu0 %v638_v18 }
  0x15   :  { %601 = vmatpush3.bf16.msra.mxu1 %v639_v19  ;;  %574 = vmatprep.subr.bf16.mxu0 %v640_v20 }
  0x16   :  { %602 = vmatprep.subr.bf16.mxu1 %v641_v21 }
  0x18   :  { %575 = vmatpush3.bf16.msra.mxu0 %v642_v22  ;;  %v439_v22 = vshrl.u32 %v438_v17, 7 }
  0x19   :  { %603 = vmatpush3.bf16.msra.mxu1 %v643_v23  ;;  %576 = vmatprep.subr.bf16.mxu0 %v644_v24 }
  0x1a   :  { %604 = vmatprep.subr.bf16.mxu1 %v645_v25  ;;  %vm486_vm0 = vcmp.eq.s32.totalorder %v439_v22, 0 }
  0x1c   :  { %577 = vmatpush3.bf16.msra.mxu0 %v646_v26 }
  0x1d   :  { %605 = vmatpush3.bf16.msra.mxu1 %v647_v27  ;;  %578 = vmatprep.subr.bf16.mxu0 %v648_v28 }
  0x1e   :  { %606 = vmatprep.subr.bf16.mxu1 %v649_v29 }
  0x20   :  { %579 = vmatpush3.bf16.msra.mxu0 %v650_v30 }
  0x21   :  { %607 = vmatpush3.bf16.msra.mxu1 %v651_v31 }
  0x23   :  { %352 = vmatmul.mubr.bf16.vlgmr.msra.gmra.mxu0 %v652_v32 }
  0x24   :  { %401 = vmatmul.mubr.bf16.vlgmr.msra.gmra.mxu1 %v655_v34  ;;  %359 = vmatprep.mubr.bf16.mxu0 %v658_v36 }
  0x25   :  { %408 = vmatprep.mubr.bf16.mxu1 %v660_v37 }
  0x2b   :  { %360 = vmatmul.mubr.bf16.gmra.mxu0 %v662_v38 }
  0x2c   :  { %409 = vmatmul.mubr.bf16.gmra.mxu1 %v663_v39 }
  0xe3   :  { %v580_v40 = vpop.f32.mrf.mxu0 }
  0xe4   :  { %v608_v41 = vpop.f32.mrf.mxu1 }
  0xe5   :  { %v581_v42 = vpop.f32.mrf.mxu0 }
  0xe6   :  { %v609_v43 = vpop.f32.mrf.mxu1  ;;  %v582_v46 = vadd.f32 %v581_v42, %v580_v40 }
  0xe7   :  { %v583_v44 = vpop.f32.mrf.mxu0  ;;  %v610_v47 = vadd.f32 %v609_v43, %v608_v41 }
  0xe8   :  { %v611_v45 = vpop.f32.mrf.mxu1 }
  0xe9   :  { %v584_v48 = vpop.f32.mrf.mxu0  ;;  %v403_v54 = vadd.f32 %v610_v47, %v582_v46 }
  0xea   :  { %v585_v49 = vadd.f32 %v584_v48, %v583_v44  ;;  %v612_v50 = vpop.f32.mrf.mxu1 }
  0xeb   :  { %v613_v51 = vadd.f32 %v612_v50, %v611_v45  ;;  %v586_v52 = vpop.f32.mrf.mxu0  ;;  %v473_v4 = vmul.f32 %v403_v54, %v403_v54 }
  0xec   :  { %v614_v53 = vpop.f32.mrf.mxu1 }
  0xed   :  { %v406_v55 = vadd.f32 %v613_v51, %v585_v49  ;;  %v587_v56 = vpop.f32.mrf.mxu0 }
  0xee   :  { %v588_v57 = vadd.f32 %v587_v56, %v586_v52  ;;  %v615_v58 = vpop.f32.mrf.mxu1 }
  0xef   :  { %v556_v59 = vpack.c.bf16 %v406_v55, %v403_v54  ;;  %v616_v60 = vadd.f32 %v615_v58, %v614_v53  ;;  %v589_v61 = vpop.f32.mrf.mxu0  ;;  %v474_v63 = vmul.f32 %v406_v55, %v406_v55  ;;  %v464_v5 = vadd.f32 %v406_v55, %v403_v54 }
  0xf0   :  { %v617_v62 = vpop.f32.mrf.mxu1 }
  0xf1   :  { %557 = vst [vmem:[%s823_s2] sm:$0xff] %v556_v59   ;;  %v411_v0 = vadd.f32 %v616_v60, %v588_v57  ;;  %v590_v1 = vpop.f32.mrf.mxu0  ;;  %v477_v8 = vadd.f32 %v474_v63, %v473_v4 }
  0xf2   :  { %v591_v2 = vadd.f32 %v590_v1, %v589_v61  ;;  %v618_v3 = vpop.f32.mrf.mxu1 }
  0xf3   :  { %v475_v6 = vmul.f32 %v411_v0, %v411_v0  ;;  %v619_v7 = vadd.f32 %v618_v3, %v617_v62  ;;  %v465_v9 = vadd.f32 %v464_v5, %v411_v0 }
  0xf5   :  { %v414_v10 = vadd.f32 %v619_v7, %v591_v2  ;;  %v478_v11 = vadd.f32 %v477_v8, %v475_v6 }
  0xf7   :  { %v561_v12 = vpack.c.bf16 %v414_v10, %v411_v0  ;;  %v466_v13 = vadd.f32 %v465_v9, %v414_v10  ;;  %v476_v14 = vmul.f32 %v414_v10, %v414_v10 }
  0xf9   :  { %563 = vst [vmem:[%s823_s2 + $0x8] sm:$0xff] %v561_v12   ;;  %v467_v15 = vrot.slane %v466_v13, 4  ;;  %v479_v16 = vadd.f32 %v478_v11, %v476_v14 }
  0xfb   :  { %v468_v18 = vadd.f32 %v467_v15, %v466_v13  ;;  %v480_v19 = vrot.slane %v479_v16, 4 }
  0xfd   :  { %v469_v20 = vrot.slane %v468_v18, 2  ;;  %v481_v21 = vadd.f32 %v480_v19, %v479_v16 }
  0xff   :  { %v470_v23 = vadd.f32 %v469_v20, %v468_v18  ;;  %v482_v24 = vrot.slane %v481_v21, 2 }
 0x101   :  { %v471_v25 = vrot.slane %v470_v23, 1  ;;  %v483_v26 = vadd.f32 %v482_v24, %v481_v21 }
 0x103   :  { %v472_v27 = vadd.f32 %v471_v25, %v470_v23  ;;  %v484_v28 = vrot.slane %v483_v26, 1 }
 0x105   :  { %v485_v29 = vadd.f32 %v484_v28, %v483_v26  ;;  %v489_v30 = vsel %vm486_vm0, %v472_v27, 0.0 }
 0x106   :  { %490 = vst [vmem:[%s824_s3] sm:$0xff] %v489_v30 }
 0x107   :  { %v491_v31 = vsel %vm486_vm0, %v485_v29, 0.0 }
 0x108   :  { %492 = vst [vmem:[%s825_s4] sm:$0xff] %v491_v31 }

// kernel: _lambda_.8
= control target key start
LH: loop header
LB: loop body
LE: loop exit
PB: predicated region body
PF: predicated region fallthrough
CT: control target
= control target key end

     0   :  { %s1459_s1 = inlined_call_operand.vmem [shape: bf16[1024,128], index: 1, kind: input, shape index: {}]   ;;  %s1460_s0 = inlined_call_operand.vmem [shape: bf16[32,1024], index: 0, kind: input, shape index: {}]   ;;  %s1461_s2 = inlined_call_operand.vmem [shape: bf16[32,128], index: 2, kind: output, shape index: {0}]   ;;  %s1462_s3 = inlined_call_operand.vmem [shape: f32[8,128], index: 3, kind: output, shape index: {1}]   ;;  %s1463_s4 = inlined_call_operand.vmem [shape: f32[8,128], index: 4, kind: output, shape index: {2}]  }
   0x1   :  { %v1118_v0 = vld [vmem:[%s1459_s1 + $0x78] sm:$0xff]   ;;  %v1122_v4 = vld [vmem:[%s1459_s1 + $0x70] sm:$0xff]   ;;  %v1126_v8 = vld [vmem:[%s1459_s1 + $0x68] sm:$0xff]  }
   0x2   :  { %v1119_v1 = vld [vmem:[%s1459_s1 + $0xf8] sm:$0xff]   ;;  %1006 = vmatprep.subr.bf16.mxu0 %v1118_v0  ;;  %v1123_v5 = vld [vmem:[%s1459_s1 + $0xf0] sm:$0xff]   ;;  %v1127_v9 = vld [vmem:[%s1459_s1 + $0xe8] sm:$0xff]  }
   0x3   :  { %v1120_v2 = vld [vmem:[%s1459_s1 + $0x38] sm:$0xff]   ;;  %1034 = vmatprep.subr.bf16.mxu1 %v1119_v1  ;;  %v1124_v6 = vld [vmem:[%s1459_s1 + $0x30] sm:$0xff]   ;;  %v1128_v10 = vld [vmem:[%s1459_s1 + $0x28] sm:$0xff]  }
   0x4   :  { %v1121_v3 = vld [vmem:[%s1459_s1 + $0xb8] sm:$0xff]   ;;  %1007 = vmatpush3.bf16.msra.mxu0 %v1120_v2  ;;  %v1125_v7 = vld [vmem:[%s1459_s1 + $0xb0] sm:$0xff]   ;;  %v1129_v11 = vld [vmem:[%s1459_s1 + $0xa8] sm:$0xff]  }
   0x5   :  { %1035 = vmatpush3.bf16.msra.mxu1 %v1121_v3  ;;  %1008 = vmatprep.subr.bf16.mxu0 %v1122_v4  ;;  %v1130_v12 = vld [vmem:[%s1459_s1 + $0x60] sm:$0xff]   ;;  %v1134_v16 = vld [vmem:[%s1459_s1 + $0x58] sm:$0xff]   ;;  %v1138_v20 = vld [vmem:[%s1459_s1 + $0x50] sm:$0xff]  }
   0x6   :  { %1036 = vmatprep.subr.bf16.mxu1 %v1123_v5  ;;  %v1131_v13 = vld [vmem:[%s1459_s1 + $0xe0] sm:$0xff]   ;;  %v1135_v17 = vld [vmem:[%s1459_s1 + $0xd8] sm:$0xff]   ;;  %v1139_v21 = vld [vmem:[%s1459_s1 + $0xd0] sm:$0xff]  }
   0x7   :  { %v1132_v14 = vld [vmem:[%s1459_s1 + $0x20] sm:$0xff]   ;;  %v1136_v18 = vld [vmem:[%s1459_s1 + $0x18] sm:$0xff]   ;;  %v1140_v22 = vld [vmem:[%s1459_s1 + $0x10] sm:$0xff]  }
   0x8   :  { %1009 = vmatpush3.bf16.msra.mxu0 %v1124_v6  ;;  %v1133_v15 = vld [vmem:[%s1459_s1 + $0xa0] sm:$0xff]   ;;  %v1137_v19 = vld [vmem:[%s1459_s1 + $0x98] sm:$0xff]   ;;  %v1141_v23 = vld [vmem:[%s1459_s1 + $0x90] sm:$0xff]  }
   0x9   :  { %1037 = vmatpush3.bf16.msra.mxu1 %v1125_v7  ;;  %1010 = vmatprep.subr.bf16.mxu0 %v1126_v8  ;;  %v1142_v24 = vld [vmem:[%s1459_s1 + $0x48] sm:$0xff]   ;;  %v1146_v28 = vld [vmem:[%s1459_s1 + $0x40] sm:$0xff]   ;;  %v1150_v40 = vld [vmem:[%s1459_s1 + $0x178] sm:$0xff]  }
   0xa   :  { %1038 = vmatprep.subr.bf16.mxu1 %v1127_v9  ;;  %v1143_v25 = vld [vmem:[%s1459_s1 + $0xc8] sm:$0xff]   ;;  %v1147_v29 = vld [vmem:[%s1459_s1 + $0xc0] sm:$0xff]   ;;  %v1151_v41 = vld [vmem:[%s1459_s1 + $0x1f8] sm:$0xff]  }
   0xb   :  { %v1144_v26 = vld [vmem:[%s1459_s1 + $0x8] sm:$0xff]   ;;  %v1148_v30 = vld [vmem:[%s1459_s1] sm:$0xff]   ;;  %v1152_v42 = vld [vmem:[%s1459_s1 + $0x138] sm:$0xff]  }
   0xc   :  { %1011 = vmatpush3.bf16.msra.mxu0 %v1128_v10  ;;  %v1145_v27 = vld [vmem:[%s1459_s1 + $0x88] sm:$0xff]   ;;  %v1149_v31 = vld [vmem:[%s1459_s1 + $0x80] sm:$0xff]   ;;  %v1153_v43 = vld [vmem:[%s1459_s1 + $0x1b8] sm:$0xff]  }
   0xd   :  { %1039 = vmatpush3.bf16.msra.mxu1 %v1129_v11  ;;  %1012 = vmatprep.subr.bf16.mxu0 %v1130_v12  ;;  %v15_v32 = vld [vmem:[%s1460_s0] sm:$0xff]  ;;  %v16_v34 = vld [vmem:[%s1460_s0 + $0x8] sm:$0xff]  ;;  %v1154_v44 = vld [vmem:[%s1459_s1 + $0x170] sm:$0xff]  }
   0xe   :  { %1040 = vmatprep.subr.bf16.mxu1 %v1131_v13  ;;  %v19_v33 = vld [vmem:[%s1460_s0 + $0x20] sm:$0xff]  ;;  %v20_v37 = vld [vmem:[%s1460_s0 + $0x28] sm:$0xff]  ;;  %v1155_v45 = vld [vmem:[%s1459_s1 + $0x1f0] sm:$0xff]  }
   0xf   :  { %v907_v35 = vcombine.low %v15_v32, %v19_v33  ;;  %v908_v36 = vcombine.high %v15_v32, %v19_v33  ;;  %v909_v38 = vcombine.low %v16_v34, %v20_v37  ;;  %v910_v39 = vcombine.high %v16_v34, %v20_v37  ;;  %v1156_v46 = vld [vmem:[%s1459_s1 + $0x130] sm:$0xff]   ;;  %v1158_v48 = vld [vmem:[%s1459_s1 + $0x168] sm:$0xff]   ;;  %v1162_v52 = vld [vmem:[%s1459_s1 + $0x160] sm:$0xff]  }
  0x10   :  { %1013 = vmatpush3.bf16.msra.mxu0 %v1132_v14  ;;  %v1157_v47 = vld [vmem:[%s1459_s1 + $0x1b0] sm:$0xff]   ;;  %v1159_v49 = vld [vmem:[%s1459_s1 + $0x1e8] sm:$0xff]   ;;  %v1163_v53 = vld [vmem:[%s1459_s1 + $0x1e0] sm:$0xff]  }
  0x11   :  { %1041 = vmatpush3.bf16.msra.mxu1 %v1133_v15  ;;  %1014 = vmatprep.subr.bf16.mxu0 %v1134_v16  ;;  %v1160_v50 = vld [vmem:[%s1459_s1 + $0x128] sm:$0xff]   ;;  %v1164_v54 = vld [vmem:[%s1459_s1 + $0x120] sm:$0xff]   ;;  %v1166_v56 = vld [vmem:[%s1459_s1 + $0x158] sm:$0xff]  }
  0x12   :  { %1042 = vmatprep.subr.bf16.mxu1 %v1135_v17  ;;  %655 = vmatprep.mubr.bf16.mxu0 %v908_v36  ;;  %v1161_v51 = vld [vmem:[%s1459_s1 + $0x1a8] sm:$0xff]   ;;  %v1165_v55 = vld [vmem:[%s1459_s1 + $0x1a0] sm:$0xff]   ;;  %v1167_v57 = vld [vmem:[%s1459_s1 + $0x1d8] sm:$0xff]  }
  0x13   :  { %704 = vmatprep.mubr.bf16.mxu1 %v910_v39  ;;  %v23_v58 = vld [vmem:[%s1460_s0 + $0x40] sm:$0xff]  ;;  %v24_v61 = vld [vmem:[%s1460_s0 + $0x48] sm:$0xff]  ;;  %v1168_v1 = vld [vmem:[%s1459_s1 + $0x118] sm:$0xff]  }
  0x14   :  { %1015 = vmatpush3.bf16.msra.mxu0 %v1136_v18  ;;  %v27_v59 = vld [vmem:[%s1460_s0 + $0x60] sm:$0xff]  ;;  %v28_v62 = vld [vmem:[%s1460_s0 + $0x68] sm:$0xff]  ;;  %v1169_v3 = vld [vmem:[%s1459_s1 + $0x198] sm:$0xff]  }
  0x15   :  { %1043 = vmatpush3.bf16.msra.mxu1 %v1137_v19  ;;  %1016 = vmatprep.subr.bf16.mxu0 %v1138_v20  ;;  %v916_v60 = vcombine.high %v23_v58, %v27_v59  ;;  %v915_v63 = vcombine.low %v23_v58, %v27_v59  ;;  %v918_v0 = vcombine.high %v24_v61, %v28_v62  ;;  %v1170_v4 = vld [vmem:[%s1459_s1 + $0x150] sm:$0xff]   ;;  %v1174_v8 = vld [vmem:[%s1459_s1 + $0x148] sm:$0xff]   ;;  %v1178_v12 = vld [vmem:[%s1459_s1 + $0x140] sm:$0xff]  }
  0x16   :  { %1044 = vmatprep.subr.bf16.mxu1 %v1139_v21  ;;  %v917_v2 = vcombine.low %v24_v61, %v28_v62  ;;  %v1171_v5 = vld [vmem:[%s1459_s1 + $0x1d0] sm:$0xff]   ;;  %v1175_v9 = vld [vmem:[%s1459_s1 + $0x1c8] sm:$0xff]   ;;  %v1179_v13 = vld [vmem:[%s1459_s1 + $0x1c0] sm:$0xff]  }
  0x17   :  { %v1172_v6 = vld [vmem:[%s1459_s1 + $0x110] sm:$0xff]   ;;  %v1176_v10 = vld [vmem:[%s1459_s1 + $0x108] sm:$0xff]   ;;  %v1180_v14 = vld [vmem:[%s1459_s1 + $0x100] sm:$0xff]  }
  0x18   :  { %1017 = vmatpush3.bf16.msra.mxu0 %v1140_v22  ;;  %v1173_v7 = vld [vmem:[%s1459_s1 + $0x190] sm:$0xff]   ;;  %v1177_v11 = vld [vmem:[%s1459_s1 + $0x188] sm:$0xff]   ;;  %v1181_v15 = vld [vmem:[%s1459_s1 + $0x180] sm:$0xff]  }
  0x19   :  { %1045 = vmatpush3.bf16.msra.mxu1 %v1141_v23  ;;  %1018 = vmatprep.subr.bf16.mxu0 %v1142_v24  ;;  %v17_v16 = vld [vmem:[%s1460_s0 + $0x10] sm:$0xff]  ;;  %v18_v18 = vld [vmem:[%s1460_s0 + $0x18] sm:$0xff] }
  0x1a   :  { %1046 = vmatprep.subr.bf16.mxu1 %v1143_v25  ;;  %v21_v17 = vld [vmem:[%s1460_s0 + $0x30] sm:$0xff]  ;;  %v22_v19 = vld [vmem:[%s1460_s0 + $0x38] sm:$0xff] }
  0x1b   :  { %v911_v20 = vcombine.low %v17_v16, %v21_v17  ;;  %v912_v21 = vcombine.high %v17_v16, %v21_v17  ;;  %v913_v22 = vcombine.low %v18_v18, %v22_v19  ;;  %v914_v23 = vcombine.high %v18_v18, %v22_v19  ;;  %v25_v24 = vld [vmem:[%s1460_s0 + $0x50] sm:$0xff] }
  0x1c   :  { %1019 = vmatpush3.bf16.msra.mxu0 %v1144_v26  ;;  %v29_v25 = vld [vmem:[%s1460_s0 + $0x70] sm:$0xff]  ;;  %v26_v26 = vld [vmem:[%s1460_s0 + $0x58] sm:$0xff] }
  0x1d   :  { %1047 = vmatpush3.bf16.msra.mxu1 %v1145_v27  ;;  %1020 = vmatprep.subr.bf16.mxu0 %v1146_v28  ;;  %v920_v27 = vcombine.high %v25_v24, %v29_v25  ;;  %v30_v28 = vld [vmem:[%s1460_s0 + $0x78] sm:$0xff] }
  0x1e   :  { %1048 = vmatprep.subr.bf16.mxu1 %v1147_v29  ;;  %v922_v29 = vcombine.high %v26_v26, %v30_v28 }
  0x20   :  { %1021 = vmatpush3.bf16.msra.mxu0 %v1148_v30  ;;  %v919_v30 = vcombine.low %v25_v24, %v29_v25 }
  0x21   :  { %1049 = vmatpush3.bf16.msra.mxu1 %v1149_v31  ;;  %1062 = vmatprep.subr.bf16.mxu0 %v1150_v40  ;;  %v921_v31 = vcombine.low %v26_v26, %v30_v28 }
  0x22   :  { %1090 = vmatprep.subr.bf16.mxu1 %v1151_v41 }
  0x23   :  { %656 = vmatmul.mubr.bf16.vlgmr.msra.gmra.mxu0 %v907_v35 }
  0x24   :  { %705 = vmatmul.mubr.bf16.vlgmr.msra.gmra.mxu1 %v909_v38  ;;  %1063 = vmatpush3.bf16.msra.mxu0 %v1152_v42 }
  0x25   :  { %1091 = vmatpush3.bf16.msra.mxu1 %v1153_v43  ;;  %1064 = vmatprep.subr.bf16.mxu0 %v1154_v44 }
  0x26   :  { %1092 = vmatprep.subr.bf16.mxu1 %v1155_v45  ;;  %663 = vmatprep.mubr.bf16.mxu0 %v916_v60 }
  0x27   :  { %712 = vmatprep.mubr.bf16.mxu1 %v918_v0 }
  0x28   :  { %1065 = vmatpush3.bf16.msra.mxu0 %v1156_v46 }
  0x29   :  { %1093 = vmatpush3.bf16.msra.mxu1 %v1157_v47  ;;  %1066 = vmatprep.subr.bf16.mxu0 %v1158_v48 }
  0x2a   :  { %1094 = vmatprep.subr.bf16.mxu1 %v1159_v49 }
  0x2b   :  { %664 = vmatmul.mubr.bf16.gmra.mxu0 %v915_v63 }
  0x2c   :  { %1067 = vmatpush3.bf16.msra.mxu0 %v1160_v50  ;;  %713 = vmatmul.mubr.bf16.gmra.mxu1 %v917_v2 }
  0x2d   :  { %1095 = vmatpush3.bf16.msra.mxu1 %v1161_v51  ;;  %1068 = vmatprep.subr.bf16.mxu0 %v1162_v52 }
  0x2e   :  { %1096 = vmatprep.subr.bf16.mxu1 %v1163_v53  ;;  %753 = vmatprep.mubr.bf16.mxu0 %v912_v21 }
  0x2f   :  { %802 = vmatprep.mubr.bf16.mxu1 %v914_v23 }
  0x30   :  { %1069 = vmatpush3.bf16.msra.mxu0 %v1164_v54  ;;  %v840_v54 = vlaneseq }
  0x31   :  { %1097 = vmatpush3.bf16.msra.mxu1 %v1165_v55  ;;  %1070 = vmatprep.subr.bf16.mxu0 %v1166_v56 }
  0x32   :  { %1098 = vmatprep.subr.bf16.mxu1 %v1167_v57 }
  0x34   :  { %1071 = vmatpush3.bf16.msra.mxu0 %v1168_v1  ;;  %v841_v1 = vshrl.u32 %v840_v54, 7 }
  0x35   :  { %1099 = vmatpush3.bf16.msra.mxu1 %v1169_v3  ;;  %1072 = vmatprep.subr.bf16.mxu0 %v1170_v4 }
  0x36   :  { %1100 = vmatprep.subr.bf16.mxu1 %v1171_v5  ;;  %vm888_vm1 = vcmp.eq.s32.totalorder %v841_v1, 0 }
  0x38   :  { %1073 = vmatpush3.bf16.msra.mxu0 %v1172_v6 }
  0x39   :  { %1101 = vmatpush3.bf16.msra.mxu1 %v1173_v7  ;;  %1074 = vmatprep.subr.bf16.mxu0 %v1174_v8 }
  0x3a   :  { %1102 = vmatprep.subr.bf16.mxu1 %v1175_v9 }
  0x3c   :  { %1075 = vmatpush3.bf16.msra.mxu0 %v1176_v10 }
  0x3d   :  { %1103 = vmatpush3.bf16.msra.mxu1 %v1177_v11  ;;  %1076 = vmatprep.subr.bf16.mxu0 %v1178_v12 }
  0x3e   :  { %1104 = vmatprep.subr.bf16.mxu1 %v1179_v13 }
  0x40   :  { %1077 = vmatpush3.bf16.msra.mxu0 %v1180_v14  ;;  %v843_v14 = vadd.s32 16, %v841_v1 }
  0x41   :  { %1105 = vmatpush3.bf16.msra.mxu1 %v1181_v15 }
  0x42   :  { %vm852_vm0 = vcmp.lt.s32.totalorder %v843_v14, 18 }
  0x43   :  { %754 = vmatmul.mubr.bf16.vlgmr.msra.gmra.mxu0 %v911_v20 }
  0x44   :  { %803 = vmatmul.mubr.bf16.vlgmr.msra.gmra.mxu1 %v913_v22  ;;  %761 = vmatprep.mubr.bf16.mxu0 %v920_v27 }
  0x45   :  { %810 = vmatprep.mubr.bf16.mxu1 %v922_v29 }
  0x4b   :  { %762 = vmatmul.mubr.bf16.gmra.mxu0 %v919_v30 }
  0x4c   :  { %811 = vmatmul.mubr.bf16.gmra.mxu1 %v921_v31 }
  0xe3   :  { %v1022_v32 = vpop.f32.mrf.mxu0 }
  0xe4   :  { %v1050_v33 = vpop.f32.mrf.mxu1 }
  0xe5   :  { %v1023_v34 = vpop.f32.mrf.mxu0 }
  0xe6   :  { %v1051_v35 = vpop.f32.mrf.mxu1  ;;  %v1024_v50 = vadd.f32 %v1023_v34, %v1022_v32 }
  0xe7   :  { %v1025_v36 = vpop.f32.mrf.mxu0  ;;  %v1052_v51 = vadd.f32 %v1051_v35, %v1050_v33 }
  0xe8   :  { %v1053_v37 = vpop.f32.mrf.mxu1 }
  0xe9   :  { %v1026_v38 = vpop.f32.mrf.mxu0  ;;  %v707_v60 = vadd.f32 %v1052_v51, %v1024_v50 }
  0xea   :  { %v1054_v39 = vpop.f32.mrf.mxu1  ;;  %v1027_v55 = vadd.f32 %v1026_v38, %v1025_v36 }
  0xeb   :  { %v1028_v40 = vpop.f32.mrf.mxu0  ;;  %v1055_v56 = vadd.f32 %v1054_v39, %v1053_v37 }
  0xec   :  { %v1056_v41 = vpop.f32.mrf.mxu1 }
  0xed   :  { %v1029_v42 = vpop.f32.mrf.mxu0  ;;  %v710_v2 = vadd.f32 %v1055_v56, %v1027_v55 }
  0xee   :  { %v1057_v43 = vpop.f32.mrf.mxu1  ;;  %v1030_v61 = vadd.f32 %v1029_v42, %v1028_v40 }
  0xef   :  { %v1031_v44 = vpop.f32.mrf.mxu0  ;;  %v1058_v62 = vadd.f32 %v1057_v43, %v1056_v41 }
  0xf0   :  { %v1059_v45 = vpop.f32.mrf.mxu1 }
  0xf1   :  { %v1032_v46 = vpop.f32.mrf.mxu0  ;;  %v715_v10 = vadd.f32 %v1058_v62, %v1030_v61 }
  0xf2   :  { %v1060_v47 = vpop.f32.mrf.mxu1  ;;  %v1033_v11 = vadd.f32 %v1032_v46, %v1031_v44 }
  0xf3   :  { %v1061_v15 = vadd.f32 %v1060_v47, %v1059_v45 }
  0xf5   :  { %v718_v27 = vadd.f32 %v1061_v15, %v1033_v11 }
 0x103   :  { %v1078_v48 = vpop.f32.mrf.mxu0 }
 0x104   :  { %v1106_v49 = vpop.f32.mrf.mxu1 }
 0x105   :  { %v1079_v52 = vpop.f32.mrf.mxu0 }
 0x106   :  { %v1107_v53 = vpop.f32.mrf.mxu1  ;;  %v1080_v57 = vadd.f32 %v1079_v52, %v1078_v48 }
 0x107   :  { %v1081_v58 = vpop.f32.mrf.mxu0  ;;  %v1108_v7 = vadd.f32 %v1107_v53, %v1106_v49 }
 0x108   :  { %v1109_v59 = vpop.f32.mrf.mxu1  ;;  %v756_v3 = vadd.f32 %v1080_v57, %v707_v60 }
 0x109   :  { %v1082_v63 = vpop.f32.mrf.mxu0 }
 0x10a   :  { %v1110_v0 = vpop.f32.mrf.mxu1  ;;  %v1083_v4 = vadd.f32 %v1082_v63, %v1081_v58  ;;  %v805_v16 = vadd.f32 %v1108_v7, %v756_v3 }
 0x10b   :  { %v1084_v5 = vpop.f32.mrf.mxu0  ;;  %v1111_v9 = vadd.f32 %v1110_v0, %v1109_v59 }
 0x10c   :  { %v1112_v6 = vpop.f32.mrf.mxu1  ;;  %v759_v8 = vadd.f32 %v1083_v4, %v710_v2  ;;  %v875_v30 = vmul.f32 %v805_v16, %v805_v16 }
 0x10d   :  { %v1085_v12 = vpop.f32.mrf.mxu0 }
 0x10e   :  { %v1113_v13 = vpop.f32.mrf.mxu1  ;;  %v808_v17 = vadd.f32 %v1111_v9, %v759_v8  ;;  %v1086_v18 = vadd.f32 %v1085_v12, %v1084_v5 }
 0x10f   :  { %v1087_v19 = vpop.f32.mrf.mxu0  ;;  %v1114_v23 = vadd.f32 %v1113_v13, %v1112_v6 }
 0x110   :  { %v1115_v20 = vpop.f32.mrf.mxu1  ;;  %v998_v21 = vpack.c.bf16 %v808_v17, %v805_v16  ;;  %v764_v22 = vadd.f32 %v1086_v18, %v715_v10  ;;  %v876_v24 = vmul.f32 %v808_v17, %v808_v17  ;;  %v866_v31 = vadd.f32 %v808_v17, %v805_v16 }
 0x111   :  { %v1088_v25 = vpop.f32.mrf.mxu0 }
 0x112   :  { %v1116_v26 = vpop.f32.mrf.mxu1  ;;  %v813_v28 = vadd.f32 %v1114_v23, %v764_v22  ;;  %v1089_v29 = vadd.f32 %v1088_v25, %v1087_v19  ;;  %999 = vst [vmem:[%s1461_s2] sm:$0xff] %v998_v21   ;;  %v879_v35 = vadd.f32 %v876_v24, %v875_v30 }
 0x113   :  { %v1117_v34 = vadd.f32 %v1116_v26, %v1115_v20 }
 0x114   :  { %v864_v32 = vsel %vm852_vm0, %v813_v28, 0.0  ;;  %v767_v33 = vadd.f32 %v1089_v29, %v718_v27 }
 0x115   :  { %v867_v36 = vadd.f32 %v866_v31, %v864_v32  ;;  %v877_v37 = vmul.f32 %v864_v32, %v864_v32 }
 0x116   :  { %v816_v38 = vadd.f32 %v1117_v34, %v767_v33 }
 0x117   :  { %v869_v39 = vrot.slane %v867_v36, 4  ;;  %v880_v40 = vadd.f32 %v879_v35, %v877_v37 }
 0x118   :  { %v1003_v41 = vpack.c.bf16 %v816_v38, %v813_v28 }
 0x119   :  { %v870_v42 = vadd.f32 %v869_v39, %v867_v36  ;;  %v882_v43 = vrot.slane %v880_v40, 4 }
 0x11a   :  { %1005 = vst [vmem:[%s1461_s2 + $0x8] sm:$0xff] %v1003_v41  }
 0x11b   :  { %v871_v44 = vrot.slane %v870_v42, 2  ;;  %v883_v45 = vadd.f32 %v882_v43, %v880_v40 }
 0x11d   :  { %v872_v46 = vadd.f32 %v871_v44, %v870_v42  ;;  %v884_v47 = vrot.slane %v883_v45, 2 }
 0x11f   :  { %v873_v48 = vrot.slane %v872_v46, 1  ;;  %v885_v49 = vadd.f32 %v884_v47, %v883_v45 }
 0x121   :  { %v874_v50 = vadd.f32 %v873_v48, %v872_v46  ;;  %v886_v51 = vrot.slane %v885_v49, 1 }
 0x123   :  { %v887_v52 = vadd.f32 %v886_v51, %v885_v49  ;;  %v891_v53 = vsel %vm888_vm1, %v874_v50, 0.0 }
 0x124   :  { %892 = vst [vmem:[%s1462_s3] sm:$0xff] %v891_v53 }
 0x125   :  { %v893_v54 = vsel %vm888_vm1, %v887_v52, 0.0 }
 0x126   :  { %894 = vst [vmem:[%s1463_s4] sm:$0xff] %v893_v54 }

// kernel: _lambda_.9
= control target key start
LH: loop header
LB: loop body
LE: loop exit
PB: predicated region body
PF: predicated region fallthrough
CT: control target
= control target key end

     0   :  { %s2386_s1 = inlined_call_operand.vmem [shape: bf16[2048,128], index: 1, kind: input, shape index: {}]   ;;  %s2387_s0 = inlined_call_operand.vmem [shape: bf16[16,2048], index: 0, kind: input, shape index: {}]   ;;  %s2388_s2 = inlined_call_operand.vmem [shape: f32[1,128], index: 2, kind: input, shape index: {}]   ;;  %s2389_s3 = inlined_call_operand.vmem [shape: f32[16,128], index: 3, kind: output, shape index: {}]  }
   0x1   :  { %v1797_v0 = vld [vmem:[%s2386_s1 + $0x78] sm:$0xff]   ;;  %v1801_v4 = vld [vmem:[%s2386_s1 + $0x70] sm:$0xff]   ;;  %v1805_v8 = vld [vmem:[%s2386_s1 + $0x68] sm:$0xff]  }
   0x2   :  { %v1798_v1 = vld [vmem:[%s2386_s1 + $0xf8] sm:$0xff]   ;;  %1621 = vmatprep.subr.bf16.mxu0 %v1797_v0  ;;  %v1802_v5 = vld [vmem:[%s2386_s1 + $0xf0] sm:$0xff]   ;;  %v1806_v9 = vld [vmem:[%s2386_s1 + $0xe8] sm:$0xff]  }
   0x3   :  { %v1799_v2 = vld [vmem:[%s2386_s1 + $0x38] sm:$0xff]   ;;  %1643 = vmatprep.subr.bf16.mxu1 %v1798_v1  ;;  %v1803_v6 = vld [vmem:[%s2386_s1 + $0x30] sm:$0xff]   ;;  %v1807_v10 = vld [vmem:[%s2386_s1 + $0x28] sm:$0xff]  }
   0x4   :  { %v1800_v3 = vld [vmem:[%s2386_s1 + $0xb8] sm:$0xff]   ;;  %1622 = vmatpush3.bf16.msra.mxu0 %v1799_v2  ;;  %v1804_v7 = vld [vmem:[%s2386_s1 + $0xb0] sm:$0xff]   ;;  %v1808_v11 = vld [vmem:[%s2386_s1 + $0xa8] sm:$0xff]  }
   0x5   :  { %1644 = vmatpush3.bf16.msra.mxu1 %v1800_v3  ;;  %1623 = vmatprep.subr.bf16.mxu0 %v1801_v4  ;;  %v1809_v12 = vld [vmem:[%s2386_s1 + $0x60] sm:$0xff]   ;;  %v1813_v16 = vld [vmem:[%s2386_s1 + $0x58] sm:$0xff]   ;;  %v1817_v20 = vld [vmem:[%s2386_s1 + $0x50] sm:$0xff]  }
   0x6   :  { %1645 = vmatprep.subr.bf16.mxu1 %v1802_v5  ;;  %v1810_v13 = vld [vmem:[%s2386_s1 + $0xe0] sm:$0xff]   ;;  %v1814_v17 = vld [vmem:[%s2386_s1 + $0xd8] sm:$0xff]   ;;  %v1818_v21 = vld [vmem:[%s2386_s1 + $0xd0] sm:$0xff]  }
   0x7   :  { %v1811_v14 = vld [vmem:[%s2386_s1 + $0x20] sm:$0xff]   ;;  %v1815_v18 = vld [vmem:[%s2386_s1 + $0x18] sm:$0xff]   ;;  %v1819_v22 = vld [vmem:[%s2386_s1 + $0x10] sm:$0xff]  }
   0x8   :  { %1624 = vmatpush3.bf16.msra.mxu0 %v1803_v6  ;;  %v1812_v15 = vld [vmem:[%s2386_s1 + $0xa0] sm:$0xff]   ;;  %v1816_v19 = vld [vmem:[%s2386_s1 + $0x98] sm:$0xff]   ;;  %v1820_v23 = vld [vmem:[%s2386_s1 + $0x90] sm:$0xff]  }
   0x9   :  { %1646 = vmatpush3.bf16.msra.mxu1 %v1804_v7  ;;  %1625 = vmatprep.subr.bf16.mxu0 %v1805_v8  ;;  %v1821_v24 = vld [vmem:[%s2386_s1 + $0x48] sm:$0xff]   ;;  %v1825_v28 = vld [vmem:[%s2386_s1 + $0x40] sm:$0xff]   ;;  %v1829_v40 = vld [vmem:[%s2386_s1 + $0x178] sm:$0xff]  }
   0xa   :  { %1647 = vmatprep.subr.bf16.mxu1 %v1806_v9  ;;  %v1822_v25 = vld [vmem:[%s2386_s1 + $0xc8] sm:$0xff]   ;;  %v1826_v29 = vld [vmem:[%s2386_s1 + $0xc0] sm:$0xff]   ;;  %v1830_v41 = vld [vmem:[%s2386_s1 + $0x1f8] sm:$0xff]  }
   0xb   :  { %v1823_v26 = vld [vmem:[%s2386_s1 + $0x8] sm:$0xff]   ;;  %v1827_v30 = vld [vmem:[%s2386_s1] sm:$0xff]   ;;  %v1831_v42 = vld [vmem:[%s2386_s1 + $0x138] sm:$0xff]  }
   0xc   :  { %1626 = vmatpush3.bf16.msra.mxu0 %v1807_v10  ;;  %v1824_v27 = vld [vmem:[%s2386_s1 + $0x88] sm:$0xff]   ;;  %v1828_v31 = vld [vmem:[%s2386_s1 + $0x80] sm:$0xff]   ;;  %v1832_v43 = vld [vmem:[%s2386_s1 + $0x1b8] sm:$0xff]  }
   0xd   :  { %1648 = vmatpush3.bf16.msra.mxu1 %v1808_v11  ;;  %1627 = vmatprep.subr.bf16.mxu0 %v1809_v12  ;;  %v15_v32 = vld [vmem:[%s2387_s0] sm:$0xff]  ;;  %v16_v34 = vld [vmem:[%s2387_s0 + $0x8] sm:$0xff]  ;;  %v1833_v44 = vld [vmem:[%s2386_s1 + $0x170] sm:$0xff]  }
   0xe   :  { %1649 = vmatprep.subr.bf16.mxu1 %v1810_v13  ;;  %v23_v33 = vld [vmem:[%s2387_s0 + $0x40] sm:$0xff]  ;;  %v24_v37 = vld [vmem:[%s2387_s0 + $0x48] sm:$0xff]  ;;  %v1834_v45 = vld [vmem:[%s2386_s1 + $0x1f0] sm:$0xff]  }
   0xf   :  { %v1477_v35 = vcombine.low %v15_v32, %v23_v33  ;;  %v1478_v36 = vcombine.high %v15_v32, %v23_v33  ;;  %v1479_v38 = vcombine.low %v16_v34, %v24_v37  ;;  %v1480_v39 = vcombine.high %v16_v34, %v24_v37  ;;  %v1835_v46 = vld [vmem:[%s2386_s1 + $0x130] sm:$0xff]   ;;  %v1837_v48 = vld [vmem:[%s2386_s1 + $0x168] sm:$0xff]   ;;  %v1841_v52 = vld [vmem:[%s2386_s1 + $0x160] sm:$0xff]  }
  0x10   :  { %1628 = vmatpush3.bf16.msra.mxu0 %v1811_v14  ;;  %v1836_v47 = vld [vmem:[%s2386_s1 + $0x1b0] sm:$0xff]   ;;  %v1838_v49 = vld [vmem:[%s2386_s1 + $0x1e8] sm:$0xff]   ;;  %v1842_v53 = vld [vmem:[%s2386_s1 + $0x1e0] sm:$0xff]  }
  0x11   :  { %1650 = vmatpush3.bf16.msra.mxu1 %v1812_v15  ;;  %1629 = vmatprep.subr.bf16.mxu0 %v1813_v16  ;;  %v1839_v50 = vld [vmem:[%s2386_s1 + $0x128] sm:$0xff]   ;;  %v1843_v54 = vld [vmem:[%s2386_s1 + $0x120] sm:$0xff]   ;;  %v1845_v56 = vld [vmem:[%s2386_s1 + $0x158] sm:$0xff]  }
  0x12   :  { %1651 = vmatprep.subr.bf16.mxu1 %v1814_v17  ;;  %1174 = vmatprep.mubr.bf16.mxu0 %v1478_v36  ;;  %v1840_v51 = vld [vmem:[%s2386_s1 + $0x1a8] sm:$0xff]   ;;  %v1844_v55 = vld [vmem:[%s2386_s1 + $0x1a0] sm:$0xff]   ;;  %v1846_v57 = vld [vmem:[%s2386_s1 + $0x1d8] sm:$0xff]  }
  0x13   :  { %1215 = vmatprep.mubr.bf16.mxu1 %v1480_v39  ;;  %v1847_v58 = vld [vmem:[%s2386_s1 + $0x118] sm:$0xff]   ;;  %v1849_v60 = vld [vmem:[%s2386_s1 + $0x150] sm:$0xff]   ;;  %v1853_v0 = vld [vmem:[%s2386_s1 + $0x148] sm:$0xff]  }
  0x14   :  { %1630 = vmatpush3.bf16.msra.mxu0 %v1815_v18  ;;  %v1848_v59 = vld [vmem:[%s2386_s1 + $0x198] sm:$0xff]   ;;  %v1850_v61 = vld [vmem:[%s2386_s1 + $0x1d0] sm:$0xff]   ;;  %v1854_v1 = vld [vmem:[%s2386_s1 + $0x1c8] sm:$0xff]  }
  0x15   :  { %1652 = vmatpush3.bf16.msra.mxu1 %v1816_v19  ;;  %1631 = vmatprep.subr.bf16.mxu0 %v1817_v20  ;;  %v1851_v62 = vld [vmem:[%s2386_s1 + $0x110] sm:$0xff]   ;;  %v1855_v2 = vld [vmem:[%s2386_s1 + $0x108] sm:$0xff]   ;;  %v1857_v4 = vld [vmem:[%s2386_s1 + $0x140] sm:$0xff]  }
  0x16   :  { %1653 = vmatprep.subr.bf16.mxu1 %v1818_v21  ;;  %v1852_v63 = vld [vmem:[%s2386_s1 + $0x190] sm:$0xff]   ;;  %v1856_v3 = vld [vmem:[%s2386_s1 + $0x188] sm:$0xff]   ;;  %v1858_v5 = vld [vmem:[%s2386_s1 + $0x1c0] sm:$0xff]  }
  0x17   :  { %v1859_v6 = vld [vmem:[%s2386_s1 + $0x100] sm:$0xff]   ;;  %v17_v8 = vld [vmem:[%s2387_s0 + $0x10] sm:$0xff]  ;;  %v18_v12 = vld [vmem:[%s2387_s0 + $0x18] sm:$0xff] }
  0x18   :  { %1632 = vmatpush3.bf16.msra.mxu0 %v1819_v22  ;;  %v1860_v7 = vld [vmem:[%s2386_s1 + $0x180] sm:$0xff]   ;;  %v25_v9 = vld [vmem:[%s2387_s0 + $0x50] sm:$0xff]  ;;  %v26_v13 = vld [vmem:[%s2387_s0 + $0x58] sm:$0xff] }
  0x19   :  { %1654 = vmatpush3.bf16.msra.mxu1 %v1820_v23  ;;  %1633 = vmatprep.subr.bf16.mxu0 %v1821_v24  ;;  %v1481_v10 = vcombine.low %v17_v8, %v25_v9  ;;  %v1482_v11 = vcombine.high %v17_v8, %v25_v9  ;;  %v1483_v14 = vcombine.low %v18_v12, %v26_v13  ;;  %v1861_v16 = vld [vmem:[%s2386_s1 + $0x278] sm:$0xff]   ;;  %v1865_v20 = vld [vmem:[%s2386_s1 + $0x270] sm:$0xff]   ;;  %v1869_v24 = vld [vmem:[%s2386_s1 + $0x268] sm:$0xff]  }
  0x1a   :  { %1655 = vmatprep.subr.bf16.mxu1 %v1822_v25  ;;  %v1484_v15 = vcombine.high %v18_v12, %v26_v13  ;;  %v1862_v17 = vld [vmem:[%s2386_s1 + $0x2f8] sm:$0xff]   ;;  %v1866_v21 = vld [vmem:[%s2386_s1 + $0x2f0] sm:$0xff]   ;;  %v1870_v25 = vld [vmem:[%s2386_s1 + $0x2e8] sm:$0xff]  }
  0x1b   :  { %v1863_v18 = vld [vmem:[%s2386_s1 + $0x238] sm:$0xff]   ;;  %v1867_v22 = vld [vmem:[%s2386_s1 + $0x230] sm:$0xff]  }
  0x1c   :  { %1634 = vmatpush3.bf16.msra.mxu0 %v1823_v26  ;;  %v1864_v19 = vld [vmem:[%s2386_s1 + $0x2b8] sm:$0xff]   ;;  %v1868_v23 = vld [vmem:[%s2386_s1 + $0x2b0] sm:$0xff]   ;;  %v1871_v26 = vld [vmem:[%s2386_s1 + $0x228] sm:$0xff]  }
  0x1d   :  { %1656 = vmatpush3.bf16.msra.mxu1 %v1824_v27  ;;  %1635 = vmatprep.subr.bf16.mxu0 %v1825_v28  ;;  %v1872_v27 = vld [vmem:[%s2386_s1 + $0x2a8] sm:$0xff]   ;;  %v1873_v28 = vld [vmem:[%s2386_s1 + $0x260] sm:$0xff]   ;;  %v1877_v32 = vld [vmem:[%s2386_s1 + $0x258] sm:$0xff]  }
  0x1e   :  { %1657 = vmatprep.subr.bf16.mxu1 %v1826_v29  ;;  %v1874_v29 = vld [vmem:[%s2386_s1 + $0x2e0] sm:$0xff]   ;;  %v1878_v33 = vld [vmem:[%s2386_s1 + $0x2d8] sm:$0xff]   ;;  %v1881_v36 = vld [vmem:[%s2386_s1 + $0x250] sm:$0xff]  }
  0x1f   :  { %v1879_v34 = vld [vmem:[%s2386_s1 + $0x218] sm:$0xff]   ;;  %v1882_v37 = vld [vmem:[%s2386_s1 + $0x2d0] sm:$0xff]  }
  0x20   :  { %1636 = vmatpush3.bf16.msra.mxu0 %v1827_v30  ;;  %v1875_v30 = vld [vmem:[%s2386_s1 + $0x220] sm:$0xff]   ;;  %v1884_v39 = vld [vmem:[%s2386_s1 + $0x290] sm:$0xff]   ;;  %v1909_v8 = vld [vmem:[%s2386_s1 + $0x358] sm:$0xff]  }
  0x21   :  { %1658 = vmatpush3.bf16.msra.mxu1 %v1828_v31  ;;  %1665 = vmatprep.subr.bf16.mxu0 %v1829_v40  ;;  %v1876_v31 = vld [vmem:[%s2386_s1 + $0x2a0] sm:$0xff]   ;;  %v1885_v40 = vld [vmem:[%s2386_s1 + $0x248] sm:$0xff]   ;;  %v1910_v9 = vld [vmem:[%s2386_s1 + $0x3d8] sm:$0xff]  }
  0x22   :  { %1687 = vmatprep.subr.bf16.mxu1 %v1830_v41  ;;  %v1886_v41 = vld [vmem:[%s2386_s1 + $0x2c8] sm:$0xff]   ;;  %v1913_v12 = vld [vmem:[%s2386_s1 + $0x350] sm:$0xff]  }
  0x23   :  { %1175 = vmatmul.mubr.bf16.vlgmr.msra.gmra.mxu0 %v1477_v35  ;;  %v1880_v35 = vld [vmem:[%s2386_s1 + $0x298] sm:$0xff]   ;;  %v1914_v13 = vld [vmem:[%s2386_s1 + $0x3d0] sm:$0xff]  }
  0x24   :  { %1216 = vmatmul.mubr.bf16.vlgmr.msra.gmra.mxu1 %v1479_v38  ;;  %1666 = vmatpush3.bf16.msra.mxu0 %v1831_v42  ;;  %v1883_v38 = vld [vmem:[%s2386_s1 + $0x210] sm:$0xff]   ;;  %v1887_v42 = vld [vmem:[%s2386_s1 + $0x208] sm:$0xff]  }
  0x25   :  { %1688 = vmatpush3.bf16.msra.mxu1 %v1832_v43  ;;  %1667 = vmatprep.subr.bf16.mxu0 %v1833_v44  ;;  %v1888_v43 = vld [vmem:[%s2386_s1 + $0x288] sm:$0xff]   ;;  %v1889_v44 = vld [vmem:[%s2386_s1 + $0x240] sm:$0xff]  }
  0x26   :  { %1689 = vmatprep.subr.bf16.mxu1 %v1834_v45  ;;  %1256 = vmatprep.mubr.bf16.mxu0 %v1482_v11  ;;  %v1890_v45 = vld [vmem:[%s2386_s1 + $0x2c0] sm:$0xff]   ;;  %v1912_v11 = vld [vmem:[%s2386_s1 + $0x398] sm:$0xff]  }
  0x27   :  { %1297 = vmatprep.mubr.bf16.mxu1 %v1484_v15  ;;  %v1916_v15 = vld [vmem:[%s2386_s1 + $0x390] sm:$0xff]  }
  0x28   :  { %1668 = vmatpush3.bf16.msra.mxu0 %v1835_v46  ;;  %v1891_v46 = vld [vmem:[%s2386_s1 + $0x200] sm:$0xff]  }
  0x29   :  { %1690 = vmatpush3.bf16.msra.mxu1 %v1836_v47  ;;  %1669 = vmatprep.subr.bf16.mxu0 %v1837_v48  ;;  %v1892_v47 = vld [vmem:[%s2386_s1 + $0x280] sm:$0xff]  }
  0x2a   :  { %1691 = vmatprep.subr.bf16.mxu1 %v1838_v49  ;;  %v19_v48 = vld [vmem:[%s2387_s0 + $0x20] sm:$0xff] }
  0x2b   :  { %v27_v49 = vld [vmem:[%s2387_s0 + $0x60] sm:$0xff] }
  0x2c   :  { %1670 = vmatpush3.bf16.msra.mxu0 %v1839_v50  ;;  %v20_v50 = vld [vmem:[%s2387_s0 + $0x28] sm:$0xff] }
  0x2d   :  { %1692 = vmatpush3.bf16.msra.mxu1 %v1840_v51  ;;  %1671 = vmatprep.subr.bf16.mxu0 %v1841_v52  ;;  %v28_v51 = vld [vmem:[%s2387_s0 + $0x68] sm:$0xff]  ;;  %v1485_v52 = vcombine.low %v19_v48, %v27_v49 }
  0x2e   :  { %1693 = vmatprep.subr.bf16.mxu1 %v1842_v53  ;;  %v1486_v53 = vcombine.high %v19_v48, %v27_v49  ;;  %v1476_v48 = vld [vmem:[%s2388_s2] ss:$0 sm:$0xff] }
  0x30   :  { %1672 = vmatpush3.bf16.msra.mxu0 %v1843_v54  ;;  %v1487_v54 = vcombine.low %v20_v50, %v28_v51 }
  0x31   :  { %1694 = vmatpush3.bf16.msra.mxu1 %v1844_v55  ;;  %1673 = vmatprep.subr.bf16.mxu0 %v1845_v56  ;;  %v1488_v55 = vcombine.high %v20_v50, %v28_v51  ;;  %v1893_v56 = vld [vmem:[%s2386_s1 + $0x378] sm:$0xff]  }
  0x32   :  { %1695 = vmatprep.subr.bf16.mxu1 %v1846_v57  ;;  %v1894_v57 = vld [vmem:[%s2386_s1 + $0x3f8] sm:$0xff]  }
  0x34   :  { %1674 = vmatpush3.bf16.msra.mxu0 %v1847_v58  ;;  %v1895_v58 = vld [vmem:[%s2386_s1 + $0x338] sm:$0xff]  }
  0x35   :  { %1696 = vmatpush3.bf16.msra.mxu1 %v1848_v59  ;;  %1675 = vmatprep.subr.bf16.mxu0 %v1849_v60  ;;  %v1896_v59 = vld [vmem:[%s2386_s1 + $0x3b8] sm:$0xff]   ;;  %v1897_v60 = vld [vmem:[%s2386_s1 + $0x370] sm:$0xff]  }
  0x36   :  { %1697 = vmatprep.subr.bf16.mxu1 %v1850_v61  ;;  %v1898_v61 = vld [vmem:[%s2386_s1 + $0x3f0] sm:$0xff]  }
  0x38   :  { %1676 = vmatpush3.bf16.msra.mxu0 %v1851_v62  ;;  %v1899_v62 = vld [vmem:[%s2386_s1 + $0x330] sm:$0xff]  }
  0x39   :  { %1698 = vmatpush3.bf16.msra.mxu1 %v1852_v63  ;;  %1677 = vmatprep.subr.bf16.mxu0 %v1853_v0  ;;  %v1900_v63 = vld [vmem:[%s2386_s1 + $0x3b0] sm:$0xff]   ;;  %v1901_v0 = vld [vmem:[%s2386_s1 + $0x368] sm:$0xff]  }
  0x3a   :  { %1699 = vmatprep.subr.bf16.mxu1 %v1854_v1  ;;  %v1902_v1 = vld [vmem:[%s2386_s1 + $0x3e8] sm:$0xff]  }
  0x3c   :  { %1678 = vmatpush3.bf16.msra.mxu0 %v1855_v2  ;;  %v1903_v2 = vld [vmem:[%s2386_s1 + $0x328] sm:$0xff]  }
  0x3d   :  { %1700 = vmatpush3.bf16.msra.mxu1 %v1856_v3  ;;  %1679 = vmatprep.subr.bf16.mxu0 %v1857_v4  ;;  %v1904_v3 = vld [vmem:[%s2386_s1 + $0x3a8] sm:$0xff]   ;;  %v1905_v4 = vld [vmem:[%s2386_s1 + $0x360] sm:$0xff]  }
  0x3e   :  { %1701 = vmatprep.subr.bf16.mxu1 %v1858_v5  ;;  %v1906_v5 = vld [vmem:[%s2386_s1 + $0x3e0] sm:$0xff]  }
  0x40   :  { %1680 = vmatpush3.bf16.msra.mxu0 %v1859_v6  ;;  %v1907_v6 = vld [vmem:[%s2386_s1 + $0x320] sm:$0xff]  }
  0x41   :  { %1702 = vmatpush3.bf16.msra.mxu1 %v1860_v7  ;;  %1709 = vmatprep.subr.bf16.mxu0 %v1861_v16  ;;  %v1908_v7 = vld [vmem:[%s2386_s1 + $0x3a0] sm:$0xff]   ;;  %v1917_v16 = vld [vmem:[%s2386_s1 + $0x348] sm:$0xff]  }
  0x42   :  { %1731 = vmatprep.subr.bf16.mxu1 %v1862_v17  ;;  %v1918_v17 = vld [vmem:[%s2386_s1 + $0x3c8] sm:$0xff]  }
  0x43   :  { %1257 = vmatmul.mubr.bf16.vlgmr.msra.gmra.mxu0 %v1481_v10  ;;  %v1911_v10 = vld [vmem:[%s2386_s1 + $0x318] sm:$0xff]  }
  0x44   :  { %1298 = vmatmul.mubr.bf16.vlgmr.msra.gmra.mxu1 %v1483_v14  ;;  %1710 = vmatpush3.bf16.msra.mxu0 %v1863_v18  ;;  %v1915_v14 = vld [vmem:[%s2386_s1 + $0x310] sm:$0xff]   ;;  %v1919_v18 = vld [vmem:[%s2386_s1 + $0x308] sm:$0xff]  }
  0x45   :  { %1732 = vmatpush3.bf16.msra.mxu1 %v1864_v19  ;;  %1711 = vmatprep.subr.bf16.mxu0 %v1865_v20  ;;  %v1920_v19 = vld [vmem:[%s2386_s1 + $0x388] sm:$0xff]   ;;  %v1921_v20 = vld [vmem:[%s2386_s1 + $0x340] sm:$0xff]  }
  0x46   :  { %1733 = vmatprep.subr.bf16.mxu1 %v1866_v21  ;;  %1338 = vmatprep.mubr.bf16.mxu0 %v1486_v53  ;;  %v1922_v21 = vld [vmem:[%s2386_s1 + $0x3c0] sm:$0xff]  }
  0x47   :  { %1379 = vmatprep.mubr.bf16.mxu1 %v1488_v55 }
  0x48   :  { %1712 = vmatpush3.bf16.msra.mxu0 %v1867_v22  ;;  %v1923_v22 = vld [vmem:[%s2386_s1 + $0x300] sm:$0xff]  }
  0x49   :  { %1734 = vmatpush3.bf16.msra.mxu1 %v1868_v23  ;;  %1713 = vmatprep.subr.bf16.mxu0 %v1869_v24  ;;  %v1924_v23 = vld [vmem:[%s2386_s1 + $0x380] sm:$0xff]   ;;  %v21_v24 = vld [vmem:[%s2387_s0 + $0x30] sm:$0xff] }
  0x4a   :  { %1735 = vmatprep.subr.bf16.mxu1 %v1870_v25  ;;  %v29_v25 = vld [vmem:[%s2387_s0 + $0x70] sm:$0xff] }
  0x4c   :  { %1714 = vmatpush3.bf16.msra.mxu0 %v1871_v26  ;;  %v22_v26 = vld [vmem:[%s2387_s0 + $0x38] sm:$0xff] }
  0x4d   :  { %1736 = vmatpush3.bf16.msra.mxu1 %v1872_v27  ;;  %1715 = vmatprep.subr.bf16.mxu0 %v1873_v28  ;;  %v1489_v27 = vcombine.low %v21_v24, %v29_v25  ;;  %v1490_v28 = vcombine.high %v21_v24, %v29_v25 }
  0x4e   :  { %1737 = vmatprep.subr.bf16.mxu1 %v1874_v29  ;;  %v30_v29 = vld [vmem:[%s2387_s0 + $0x78] sm:$0xff] }
  0x50   :  { %1716 = vmatpush3.bf16.msra.mxu0 %v1875_v30  ;;  %v1491_v30 = vcombine.low %v22_v26, %v30_v29 }
  0x51   :  { %1738 = vmatpush3.bf16.msra.mxu1 %v1876_v31  ;;  %1717 = vmatprep.subr.bf16.mxu0 %v1877_v32  ;;  %v1492_v31 = vcombine.high %v22_v26, %v30_v29 }
  0x52   :  { %1739 = vmatprep.subr.bf16.mxu1 %v1878_v33 }
  0x54   :  { %1718 = vmatpush3.bf16.msra.mxu0 %v1879_v34 }
  0x55   :  { %1740 = vmatpush3.bf16.msra.mxu1 %v1880_v35  ;;  %1719 = vmatprep.subr.bf16.mxu0 %v1881_v36 }
  0x56   :  { %1741 = vmatprep.subr.bf16.mxu1 %v1882_v37 }
  0x58   :  { %1720 = vmatpush3.bf16.msra.mxu0 %v1883_v38 }
  0x59   :  { %1742 = vmatpush3.bf16.msra.mxu1 %v1884_v39  ;;  %1721 = vmatprep.subr.bf16.mxu0 %v1885_v40 }
  0x5a   :  { %1743 = vmatprep.subr.bf16.mxu1 %v1886_v41 }
  0x5c   :  { %1722 = vmatpush3.bf16.msra.mxu0 %v1887_v42 }
  0x5d   :  { %1744 = vmatpush3.bf16.msra.mxu1 %v1888_v43  ;;  %1723 = vmatprep.subr.bf16.mxu0 %v1889_v44 }
  0x5e   :  { %1745 = vmatprep.subr.bf16.mxu1 %v1890_v45 }
  0x60   :  { %1724 = vmatpush3.bf16.msra.mxu0 %v1891_v46 }
  0x61   :  { %1746 = vmatpush3.bf16.msra.mxu1 %v1892_v47  ;;  %1753 = vmatprep.subr.bf16.mxu0 %v1893_v56 }
  0x62   :  { %1775 = vmatprep.subr.bf16.mxu1 %v1894_v57 }
  0x63   :  { %1339 = vmatmul.mubr.bf16.vlgmr.msra.gmra.mxu0 %v1485_v52 }
  0x64   :  { %1380 = vmatmul.mubr.bf16.vlgmr.msra.gmra.mxu1 %v1487_v54  ;;  %1754 = vmatpush3.bf16.msra.mxu0 %v1895_v58 }
  0x65   :  { %1776 = vmatpush3.bf16.msra.mxu1 %v1896_v59  ;;  %1755 = vmatprep.subr.bf16.mxu0 %v1897_v60 }
  0x66   :  { %1777 = vmatprep.subr.bf16.mxu1 %v1898_v61  ;;  %1420 = vmatprep.mubr.bf16.mxu0 %v1490_v28 }
  0x67   :  { %1461 = vmatprep.mubr.bf16.mxu1 %v1492_v31 }
  0x68   :  { %1756 = vmatpush3.bf16.msra.mxu0 %v1899_v62 }
  0x69   :  { %1778 = vmatpush3.bf16.msra.mxu1 %v1900_v63  ;;  %1757 = vmatprep.subr.bf16.mxu0 %v1901_v0 }
  0x6a   :  { %1779 = vmatprep.subr.bf16.mxu1 %v1902_v1 }
  0x6c   :  { %1758 = vmatpush3.bf16.msra.mxu0 %v1903_v2 }
  0x6d   :  { %1780 = vmatpush3.bf16.msra.mxu1 %v1904_v3  ;;  %1759 = vmatprep.subr.bf16.mxu0 %v1905_v4 }
  0x6e   :  { %1781 = vmatprep.subr.bf16.mxu1 %v1906_v5 }
  0x70   :  { %1760 = vmatpush3.bf16.msra.mxu0 %v1907_v6 }
  0x71   :  { %1782 = vmatpush3.bf16.msra.mxu1 %v1908_v7  ;;  %1761 = vmatprep.subr.bf16.mxu0 %v1909_v8 }
  0x72   :  { %1783 = vmatprep.subr.bf16.mxu1 %v1910_v9 }
  0x74   :  { %1762 = vmatpush3.bf16.msra.mxu0 %v1911_v10 }
  0x75   :  { %1784 = vmatpush3.bf16.msra.mxu1 %v1912_v11  ;;  %1763 = vmatprep.subr.bf16.mxu0 %v1913_v12 }
  0x76   :  { %1785 = vmatprep.subr.bf16.mxu1 %v1914_v13 }
  0x78   :  { %1764 = vmatpush3.bf16.msra.mxu0 %v1915_v14 }
  0x79   :  { %1786 = vmatpush3.bf16.msra.mxu1 %v1916_v15  ;;  %1765 = vmatprep.subr.bf16.mxu0 %v1917_v16 }
  0x7a   :  { %1787 = vmatprep.subr.bf16.mxu1 %v1918_v17 }
  0x7c   :  { %1766 = vmatpush3.bf16.msra.mxu0 %v1919_v18 }
  0x7d   :  { %1788 = vmatpush3.bf16.msra.mxu1 %v1920_v19  ;;  %1767 = vmatprep.subr.bf16.mxu0 %v1921_v20 }
  0x7e   :  { %1789 = vmatprep.subr.bf16.mxu1 %v1922_v21 }
  0x80   :  { %1768 = vmatpush3.bf16.msra.mxu0 %v1923_v22 }
  0x81   :  { %1790 = vmatpush3.bf16.msra.mxu1 %v1924_v23 }
  0x83   :  { %1421 = vmatmul.mubr.bf16.vlgmr.msra.gmra.mxu0 %v1489_v27 }
  0x84   :  { %1462 = vmatmul.mubr.bf16.vlgmr.msra.gmra.mxu1 %v1491_v30 }
  0xe3   :  { %v1637_v32 = vpop.f32.mrf.mxu0 }
  0xe4   :  { %v1659_v33 = vpop.f32.mrf.mxu1 }
  0xe5   :  { %v1638_v34 = vpop.f32.mrf.mxu0 }
  0xe6   :  { %v1660_v35 = vpop.f32.mrf.mxu1  ;;  %v1639_v47 = vadd.f32 %v1638_v34, %v1637_v32 }
  0xe7   :  { %v1640_v36 = vpop.f32.mrf.mxu0  ;;  %v1661_v52 = vadd.f32 %v1660_v35, %v1659_v33 }
  0xe8   :  { %v1662_v37 = vpop.f32.mrf.mxu1  ;;  %v1177_v51 = vadd.f32 %v1639_v47, %v1476_v48 }
  0xe9   :  { %v1641_v38 = vpop.f32.mrf.mxu0 }
  0xea   :  { %v1663_v40 = vpop.f32.mrf.mxu1  ;;  %v1642_v53 = vadd.f32 %v1641_v38, %v1640_v36  ;;  %v1218_v57 = vadd.f32 %v1661_v52, %v1177_v51 }
  0xeb   :  { %v1664_v61 = vadd.f32 %v1663_v40, %v1662_v37 }
  0xec   :  { %v1180_v58 = vadd.f32 %v1642_v53, %v1476_v48 }
  0xee   :  { %v1221_v1 = vadd.f32 %v1664_v61, %v1180_v58 }
 0x103   :  { %v1681_v39 = vpop.f32.mrf.mxu0 }
 0x104   :  { %v1703_v41 = vpop.f32.mrf.mxu1 }
 0x105   :  { %v1682_v42 = vpop.f32.mrf.mxu0 }
 0x106   :  { %v1704_v43 = vpop.f32.mrf.mxu1  ;;  %v1683_v56 = vadd.f32 %v1682_v42, %v1681_v39 }
 0x107   :  { %v1684_v44 = vpop.f32.mrf.mxu0  ;;  %v1705_v63 = vadd.f32 %v1704_v43, %v1703_v41 }
 0x108   :  { %v1706_v45 = vpop.f32.mrf.mxu1  ;;  %v1259_v62 = vadd.f32 %v1683_v56, %v1218_v57 }
 0x109   :  { %v1685_v46 = vpop.f32.mrf.mxu0 }
 0x10a   :  { %v1707_v50 = vpop.f32.mrf.mxu1  ;;  %v1686_v0 = vadd.f32 %v1685_v46, %v1684_v44  ;;  %v1300_v5 = vadd.f32 %v1705_v63, %v1259_v62 }
 0x10b   :  { %v1708_v7 = vadd.f32 %v1707_v50, %v1706_v45 }
 0x10c   :  { %v1262_v6 = vadd.f32 %v1686_v0, %v1221_v1 }
 0x10e   :  { %v1303_v13 = vadd.f32 %v1708_v7, %v1262_v6 }
 0x123   :  { %v1725_v49 = vpop.f32.mrf.mxu0 }
 0x124   :  { %v1747_v54 = vpop.f32.mrf.mxu1 }
 0x125   :  { %v1726_v55 = vpop.f32.mrf.mxu0 }
 0x126   :  { %v1748_v59 = vpop.f32.mrf.mxu1  ;;  %v1727_v2 = vadd.f32 %v1726_v55, %v1725_v49 }
 0x127   :  { %v1728_v60 = vpop.f32.mrf.mxu0  ;;  %v1749_v9 = vadd.f32 %v1748_v59, %v1747_v54 }
 0x128   :  { %v1750_v3 = vpop.f32.mrf.mxu1  ;;  %v1341_v8 = vadd.f32 %v1727_v2, %v1300_v5 }
 0x129   :  { %v1729_v4 = vpop.f32.mrf.mxu0 }
 0x12a   :  { %v1730_v10 = vadd.f32 %v1729_v4, %v1728_v60  ;;  %v1751_v11 = vpop.f32.mrf.mxu1  ;;  %v1382_v16 = vadd.f32 %v1749_v9, %v1341_v8 }
 0x12b   :  { %v1752_v21 = vadd.f32 %v1751_v11, %v1750_v3 }
 0x12c   :  { %v1344_v17 = vadd.f32 %v1730_v10, %v1303_v13 }
 0x12e   :  { %v1385_v26 = vadd.f32 %v1752_v21, %v1344_v17 }
 0x143   :  { %v1769_v12 = vpop.f32.mrf.mxu0 }
 0x144   :  { %v1791_v14 = vpop.f32.mrf.mxu1 }
 0x145   :  { %v1770_v15 = vpop.f32.mrf.mxu0 }
 0x146   :  { %v1771_v18 = vadd.f32 %v1770_v15, %v1769_v12  ;;  %v1792_v19 = vpop.f32.mrf.mxu1 }
 0x147   :  { %v1772_v20 = vpop.f32.mrf.mxu0  ;;  %v1793_v23 = vadd.f32 %v1792_v19, %v1791_v14 }
 0x148   :  { %v1423_v22 = vadd.f32 %v1771_v18, %v1382_v16  ;;  %v1794_v24 = vpop.f32.mrf.mxu1 }
 0x149   :  { %v1773_v25 = vpop.f32.mrf.mxu0 }
 0x14a   :  { %v1464_v27 = vadd.f32 %v1793_v23, %v1423_v22  ;;  %v1774_v28 = vadd.f32 %v1773_v25, %v1772_v20  ;;  %v1795_v29 = vpop.f32.mrf.mxu1 }
 0x14b   :  { %v1796_v31 = vadd.f32 %v1795_v29, %v1794_v24 }
 0x14c   :  { %1470 = vst [vmem:[%s2389_s3] sm:$0xff] %v1464_v27  ;;  %v1426_v30 = vadd.f32 %v1774_v28, %v1385_v26 }
 0x14e   :  { %v1467_v32 = vadd.f32 %v1796_v31, %v1426_v30 }
 0x150   :  { %1471 = vst [vmem:[%s2389_s3 + $0x8] sm:$0xff] %v1467_v32 }

</bundles_post_ra>
